<compile_context>
chip_gen: v7x
topology: tpu7x:2x2x1
jax: 0.10.0
libtpu: 0.0.40
codegen_flags: <defaults>
</compile_context>

<pallas_src>
import functools

import jax
import jax.numpy as jnp
import numpy as np
from jax import lax
from jax.experimental import pallas as pl
from jax.experimental.pallas import tpu as pltpu


def _softmax(x, axis, approx):
    """Hand-rolled softmax: max/exp/sum + EUP reciprocal (no full divide)."""
    m = jnp.max(x, axis=axis, keepdims=True)
    e = jnp.exp(x - m)
    s = jnp.sum(e, axis=axis, keepdims=True)
    return e * pl.reciprocal(s, approx=approx)


def _linear_attention_kernel(x_ref, wqkv_ref, wout_ref, bout_ref, g_ref, o_ref,
                             *, heads, dim_head, dim, n, bt, mxu_dtype,
                             approx_recip):
    hidden = heads * dim_head
    scale = dim_head ** -0.5
    cols = bt * n

    def mm(a, b, dn=None):
        # Operands that live across the loops are pre-cast, so these astypes
        # are no-ops except for freshly produced f32 intermediates
        # (attn / ctx / out_stack), which must be cast where produced anyway.
        a = a.astype(mxu_dtype)
        b = b.astype(mxu_dtype)
        if dn is None:
            return jnp.dot(a, b, preferred_element_type=jnp.float32)
        return lax.dot_general(a, b, dn, preferred_element_type=jnp.float32)

    x = x_ref[...].astype(mxu_dtype)   # (dim, cols): lane-dense, batch folded, cast once
    w_out = wout_ref[...]              # (dim, hidden), pre-cast by the wrapper
    b_out = bout_ref[...]              # (dim, 1) f32
    g = g_ref[...]                     # (dim, 1) f32

    # to_qkv 1x1 conv == channel matmul over the batch-folded slab; the weight
    # operand is (dim, 3*hidden) so its wide axis is lane-dense.
    qkv = mm(wqkv_ref[...], x, (((0,), (0,)), ((), ())))   # (3*hidden, cols) f32

    k_all = qkv[hidden:2 * hidden]                          # (hidden, cols) f32
    v_all = qkv[2 * hidden:3 * hidden].astype(mxu_dtype)    # cast once

    # q softmax (over head channels) is column-local: compute it once per head
    # over the full batch-folded slab, outside the segment loop, then cast once.
    # TODO(synk): fuse the 4 per-head q softmaxes into one grouped reduce via a
    # (heads, dim_head, cols) view once that reshape is profiled on Mosaic.
    q_heads = []
    for h in range(heads):
        row = slice(h * dim_head, (h + 1) * dim_head)
        q_h = _softmax(qkv[row], axis=0, approx=approx_recip) * scale
        q_heads.append(q_h.astype(mxu_dtype))               # (dim_head, cols)

    for j in range(bt):                    # static loop over batch segments
        col = slice(j * n, (j + 1) * n)
        # k softmax is over the sequence (lane) axis; one softmax per segment
        # covers all heads at once.
        k_seg = _softmax(k_all[:, col], axis=1, approx=approx_recip)
        k_seg = k_seg.astype(mxu_dtype)                      # (hidden, n)
        v_seg = v_all[:, col]                                # (hidden, n)

        outs = []
        for h in range(heads):             # static, tiny loop
            row = slice(h * dim_head, (h + 1) * dim_head)
            q = q_heads[h][:, col]                           # (d, n)
            k = k_seg[row]                                   # (d, n)
            v = v_seg[row]                                   # (d, n)
            if n <= dim_head:
                # out_h = v @ (k^T q): fewer MXU flops via the (n, n) intermediate.
                attn = mm(k, q, (((0,), (0,)), ((), ())))        # (n, n)
                out_h = mm(v, attn)                              # (d, n)
            else:
                ctx = mm(k, v, (((1,), (1,)), ((), ())))         # (d, d)
                out_h = mm(ctx, q, (((0,), (0,)), ((), ())))     # (d, n)
            outs.append(out_h)

        # Sublane-stack heads (dim_head is a multiple of 8 -> layout-free) and
        # apply the to_out 1x1 conv as a single K=hidden matmul.
        out_stack = outs[0] if heads == 1 else jnp.concatenate(outs, axis=0)
        y = mm(w_out, out_stack) + b_out                         # (dim, n) f32

        # RMSNorm over channels is per-column, so finish and store this segment
        # directly (no lane-axis concat of segments).
        sumsq = jnp.sum(y * y, axis=0, keepdims=True)
        y = y * lax.rsqrt(jnp.maximum(sumsq, 1e-24))   # == y / max(||y||_2, 1e-12)
        y = y * g * (dim ** 0.5)
        o_ref[:, col] = y.astype(o_ref.dtype)


def linear_attention_pallas(x, w_qkv, w_out, b_out, g, *, heads, dim_head,
                            mxu_dtype=jnp.float32, block_b=None):
    b, dim, n = x.shape
    hidden = heads * dim_head
    assert w_qkv.shape == (3 * hidden, dim)
    assert w_out.shape == (dim, hidden)

    bt = b if block_b is None else block_b
    assert b % bt == 0
    # (8,128) BlockSpec rule: a partial-batch block needs a 128-multiple lane width.
    assert bt == b or (bt * n) % 128 == 0
    cols = bt * n

    # Fold batch into the lane (fast) axis: (B, dim, N) -> (dim, B*N).
    x_flat = jnp.transpose(x, (1, 0, 2)).reshape(dim, b * n)
    # Lane-dense qkv weight; weights pre-cast so the bf16 path needs no
    # per-iteration in-kernel converts and weight DMA bytes are halved.
    w_qkv_t = jnp.transpose(w_qkv).astype(mxu_dtype)   # (dim, 3*hidden)
    w_out_c = w_out.astype(mxu_dtype)                  # (dim, hidden)

    approx_recip = jnp.dtype(mxu_dtype) != jnp.dtype(jnp.float32)

    kernel = functools.partial(
        _linear_attention_kernel, heads=heads, dim_head=dim_head, dim=dim, n=n,
        bt=bt, mxu_dtype=mxu_dtype, approx_recip=approx_recip)

    # TODO(synk): for production shapes keep cols a multiple of 128 (pad N /
    # grow block_b) so stores are unmasked vst, split the grid into >=2
    # "parallel" blocks so both v7x TensorCores are used, budget the f32 qkv
    # intermediate (~3*hidden*cols*4 B) against v7x's 64 MiB VMEM via
    # CompilerParams(vmem_limit_bytes=...), and switch the head loop to
    # lax.fori_loop(..., unroll=True) if heads/N grow.
    out_flat = pl.pallas_call(
        kernel,
        out_shape=jax.ShapeDtypeStruct((dim, b * n), jnp.float32),
        grid_spec=pltpu.PrefetchScalarGridSpec(
            num_scalar_prefetch=0,
            grid=(b // bt,),
            in_specs=[
                pl.BlockSpec((dim, cols), lambda i: (0, i)),        # x (folded)
                pl.BlockSpec((dim, 3 * hidden), lambda i: (0, 0)),  # w_qkv^T (resident)
                pl.BlockSpec((dim, hidden), lambda i: (0, 0)),      # w_out (resident)
                pl.BlockSpec((dim, 1), lambda i: (0, 0)),           # conv bias
                pl.BlockSpec((dim, 1), lambda i: (0, 0)),           # RMSNorm g
            ],
            out_specs=pl.BlockSpec((dim, cols), lambda i: (0, i)),
        ),
        compiler_params=pltpu.CompilerParams(
            dimension_semantics=("parallel",)),
    )(x_flat, w_qkv_t, w_out_c, b_out, g)

    # (dim, B*N) -> (B, dim, N)
    return out_flat.reshape(dim, b, n).transpose(1, 0, 2)


def linear_attention_ref(x, w_qkv, w_out, b_out, g, *, heads, dim_head):
    """Pure-JAX reference matching the PyTorch module semantics."""
    b, dim, n = x.shape
    hidden = heads * dim_head
    scale = dim_head ** -0.5
    qkv = jnp.einsum('oc,bcn->bon', w_qkv, x)                     # (b, 3H, n)
    q, k, v = jnp.split(qkv, 3, axis=1)
    rs = lambda t: t.reshape(b, heads, dim_head, n)
    q, k, v = rs(q), rs(k), rs(v)
    q = jax.nn.softmax(q, axis=-2) * scale
    k = jax.nn.softmax(k, axis=-1)
    context = jnp.einsum('bhdn,bhen->bhde', k, v)
    out = jnp.einsum('bhde,bhdn->bhen', context, q)
    out = out.reshape(b, hidden, n)
    y = jnp.einsum('oc,bcn->bon', w_out, out) + b_out[None, :, :]
    norm = jnp.sqrt(jnp.sum(y * y, axis=1, keepdims=True))
    y = y / jnp.maximum(norm, 1e-12)
    return y * g[None, :, :] * (dim ** 0.5)


if __name__ == "__main__":
    # Shapes consistent with the module: dim=8 channels, seq n=16,
    # heads=4, dim_head=32 (module defaults) -> hidden=128.
    B, DIM, N = 2, 8, 16
    HEADS, DIM_HEAD = 4, 32
    HIDDEN = HEADS * DIM_HEAD

    key = jax.random.PRNGKey(0)
    kx, kq, kw, kb = jax.random.split(key, 4)

    x = jax.random.normal(kx, (B, DIM, N), dtype=jnp.float32)
    # Conv1d(dim, 3*hidden, 1, bias=False) weight -> (3*hidden, dim)
    w_qkv = jax.random.normal(kq, (3 * HIDDEN, DIM), dtype=jnp.float32) * 0.1
    # Conv1d(hidden, dim, 1) weight/bias -> (dim, hidden), (dim, 1)
    w_out = jax.random.normal(kw, (DIM, HIDDEN), dtype=jnp.float32) * 0.1
    b_out = jax.random.normal(kb, (DIM, 1), dtype=jnp.float32) * 0.1
    # RMSNorm g parameter (ones), shape (dim, 1)
    g = jnp.ones((DIM, 1), dtype=jnp.float32)

    ref = linear_attention_ref(x, w_qkv, w_out, b_out, g,
                               heads=HEADS, dim_head=DIM_HEAD)

    # Default (f32 MXU operands) path: tight check vs reference.
    out = linear_attention_pallas(x, w_qkv, w_out, b_out, g,
                                  heads=HEADS, dim_head=DIM_HEAD)
    out = jax.block_until_ready(out)
    np.testing.assert_allclose(np.asarray(out), np.asarray(ref),
                               atol=2e-5, rtol=2e-5)

    # bf16 MXU-operand fast path (v6e / v7x): f32 accumulate, f32 softmax and
    # RMSNorm; loose sanity check only.
    out_bf16 = linear_attention_pallas(x, w_qkv, w_out, b_out, g,
                                       heads=HEADS, dim_head=DIM_HEAD,
                                       mxu_dtype=jnp.bfloat16)
    out_bf16 = jax.block_until_ready(out_bf16)
    np.testing.assert_allclose(np.asarray(out_bf16), np.asarray(ref),
                               atol=5e-2, rtol=5e-2)

    print("KERNEL_OK")
</pallas_src>

<mosaic_0001>
module attributes {stable_mosaic.version = 11 : i64} {
  func.func @_linear_attention_kernel(%arg0: i32, %arg1: memref<8x32xf32, #tpu.memory_space<vmem>>, %arg2: memref<8x384xf32, #tpu.memory_space<vmem>>, %arg3: memref<8x128xf32, #tpu.memory_space<vmem>>, %arg4: memref<8x1xf32, #tpu.memory_space<vmem>>, %arg5: memref<8x1xf32, #tpu.memory_space<vmem>>, %arg6: memref<8x32xf32, #tpu.memory_space<vmem>>) attributes {dimension_semantics = [#tpu.dimension_semantics<parallel>], iteration_bounds = array<i64: 1>, scalar_prefetch = 0 : i64, scratch_operands = 0 : i64, tpu.core_type = #tpu.core_type<tc>, window_params = [{transform_indices = @transform_0, window_bounds = array<i64: 8, 32>}, {pipeline_mode = #tpu.pipeline_mode<synchronous>, transform_indices = @transform_1, window_bounds = array<i64: 8, 384>}, {pipeline_mode = #tpu.pipeline_mode<synchronous>, transform_indices = @transform_2, window_bounds = array<i64: 8, 128>}, {pipeline_mode = #tpu.pipeline_mode<synchronous>, transform_indices = @transform_3, window_bounds = array<i64: 8, 1>}, {pipeline_mode = #tpu.pipeline_mode<synchronous>, transform_indices = @transform_4, window_bounds = array<i64: 8, 1>}, {transform_indices = @transform_5, window_bounds = array<i64: 8, 32>}]} {
    %c0 = arith.constant 0 : index
    %c0_0 = arith.constant 0 : index
    %0 = vector.load %arg1[%c0, %c0_0] : memref<8x32xf32, #tpu.memory_space<vmem>>, vector<8x32xf32>
    %c0_1 = arith.constant 0 : index
    %c0_2 = arith.constant 0 : index
    %1 = vector.load %arg3[%c0_1, %c0_2] : memref<8x128xf32, #tpu.memory_space<vmem>>, vector<8x128xf32>
    %c0_3 = arith.constant 0 : index
    %c0_4 = arith.constant 0 : index
    %2 = vector.load %arg4[%c0_3, %c0_4] : memref<8x1xf32, #tpu.memory_space<vmem>>, vector<8x1xf32>
    %c0_5 = arith.constant 0 : index
    %c0_6 = arith.constant 0 : index
    %3 = vector.load %arg5[%c0_5, %c0_6] : memref<8x1xf32, #tpu.memory_space<vmem>>, vector<8x1xf32>
    %c0_7 = arith.constant 0 : index
    %c0_8 = arith.constant 0 : index
    %4 = vector.load %arg2[%c0_7, %c0_8] : memref<8x384xf32, #tpu.memory_space<vmem>>, vector<8x384xf32>
    %cst = arith.constant dense<0.000000e+00> : vector<384x32xf32>
    %5 = tpu.matmul %4, %0, %cst {dimension_numbers = #tpu.dot_dimension_numbers<[0], [0], [1], [1], [0, 1, 1, 1], [], []>} : vector<8x384xf32>, vector<8x32xf32>, vector<384x32xf32> -> vector<384x32xf32>
    %6 = vector.extract_strided_slice %5 {offsets = [128, 0], sizes = [128, 32], strides = [1, 1]} : vector<384x32xf32> to vector<128x32xf32>
    %7 = vector.extract_strided_slice %5 {offsets = [256, 0], sizes = [128, 32], strides = [1, 1]} : vector<384x32xf32> to vector<128x32xf32>
    %8 = vector.extract_strided_slice %5 {offsets = [0, 0], sizes = [32, 32], strides = [1, 1]} : vector<384x32xf32> to vector<32x32xf32>
    %cst_9 = arith.constant dense<0xFF800000> : vector<32xf32>
    %9 = vector.multi_reduction <maximumf>, %8, %cst_9 [0] : vector<32x32xf32> to vector<32xf32>
    %10 = vector.shape_cast %9 : vector<32xf32> to vector<1x32xf32>
    %11 = vector.broadcast %10 : vector<1x32xf32> to vector<32x32xf32>
    %12 = arith.subf %8, %11 : vector<32x32xf32>
    %13 = math.exp %12 : vector<32x32xf32>
    %cst_10 = arith.constant dense<0.000000e+00> : vector<32xf32>
    %14 = vector.multi_reduction <add>, %13, %cst_10 [0] : vector<32x32xf32> to vector<32xf32>
    %15 = vector.shape_cast %14 : vector<32xf32> to vector<1x32xf32>
    %16 = tpu.reciprocal %15 : vector<1x32xf32> -> vector<1x32xf32>
    %17 = vector.broadcast %16 : vector<1x32xf32> to vector<32x32xf32>
    %18 = arith.mulf %13, %17 : vector<32x32xf32>
    %cst_11 = arith.constant 0.176776692 : f32
    %19 = vector.broadcast %cst_11 : f32 to vector<32x32xf32>
    %20 = arith.mulf %18, %19 : vector<32x32xf32>
    %21 = vector.extract_strided_slice %5 {offsets = [32, 0], sizes = [32, 32], strides = [1, 1]} : vector<384x32xf32> to vector<32x32xf32>
    %cst_12 = arith.constant dense<0xFF800000> : vector<32xf32>
    %22 = vector.multi_reduction <maximumf>, %21, %cst_12 [0] : vector<32x32xf32> to vector<32xf32>
    %23 = vector.shape_cast %22 : vector<32xf32> to vector<1x32xf32>
    %24 = vector.broadcast %23 : vector<1x32xf32> to vector<32x32xf32>
    %25 = arith.subf %21, %24 : vector<32x32xf32>
    %26 = math.exp %25 : vector<32x32xf32>
    %cst_13 = arith.constant dense<0.000000e+00> : vector<32xf32>
    %27 = vector.multi_reduction <add>, %26, %cst_13 [0] : vector<32x32xf32> to vector<32xf32>
    %28 = vector.shape_cast %27 : vector<32xf32> to vector<1x32xf32>
    %29 = tpu.reciprocal %28 : vector<1x32xf32> -> vector<1x32xf32>
    %30 = vector.broadcast %29 : vector<1x32xf32> to vector<32x32xf32>
    %31 = arith.mulf %26, %30 : vector<32x32xf32>
    %cst_14 = arith.constant 0.176776692 : f32
    %32 = vector.broadcast %cst_14 : f32 to vector<32x32xf32>
    %33 = arith.mulf %31, %32 : vector<32x32xf32>
    %34 = vector.extract_strided_slice %5 {offsets = [64, 0], sizes = [32, 32], strides = [1, 1]} : vector<384x32xf32> to vector<32x32xf32>
    %cst_15 = arith.constant dense<0xFF800000> : vector<32xf32>
    %35 = vector.multi_reduction <maximumf>, %34, %cst_15 [0] : vector<32x32xf32> to vector<32xf32>
    %36 = vector.shape_cast %35 : vector<32xf32> to vector<1x32xf32>
    %37 = vector.broadcast %36 : vector<1x32xf32> to vector<32x32xf32>
    %38 = arith.subf %34, %37 : vector<32x32xf32>
    %39 = math.exp %38 : vector<32x32xf32>
    %cst_16 = arith.constant dense<0.000000e+00> : vector<32xf32>
    %40 = vector.multi_reduction <add>, %39, %cst_16 [0] : vector<32x32xf32> to vector<32xf32>
    %41 = vector.shape_cast %40 : vector<32xf32> to vector<1x32xf32>
    %42 = tpu.reciprocal %41 : vector<1x32xf32> -> vector<1x32xf32>
    %43 = vector.broadcast %42 : vector<1x32xf32> to vector<32x32xf32>
    %44 = arith.mulf %39, %43 : vector<32x32xf32>
    %cst_17 = arith.constant 0.176776692 : f32
    %45 = vector.broadcast %cst_17 : f32 to vector<32x32xf32>
    %46 = arith.mulf %44, %45 : vector<32x32xf32>
    %47 = vector.extract_strided_slice %5 {offsets = [96, 0], sizes = [32, 32], strides = [1, 1]} : vector<384x32xf32> to vector<32x32xf32>
    %cst_18 = arith.constant dense<0xFF800000> : vector<32xf32>
    %48 = vector.multi_reduction <maximumf>, %47, %cst_18 [0] : vector<32x32xf32> to vector<32xf32>
    %49 = vector.shape_cast %48 : vector<32xf32> to vector<1x32xf32>
    %50 = vector.broadcast %49 : vector<1x32xf32> to vector<32x32xf32>
    %51 = arith.subf %47, %50 : vector<32x32xf32>
    %52 = math.exp %51 : vector<32x32xf32>
    %cst_19 = arith.constant dense<0.000000e+00> : vector<32xf32>
    %53 = vector.multi_reduction <add>, %52, %cst_19 [0] : vector<32x32xf32> to vector<32xf32>
    %54 = vector.shape_cast %53 : vector<32xf32> to vector<1x32xf32>
    %55 = tpu.reciprocal %54 : vector<1x32xf32> -> vector<1x32xf32>
    %56 = vector.broadcast %55 : vector<1x32xf32> to vector<32x32xf32>
    %57 = arith.mulf %52, %56 : vector<32x32xf32>
    %cst_20 = arith.constant 0.176776692 : f32
    %58 = vector.broadcast %cst_20 : f32 to vector<32x32xf32>
    %59 = arith.mulf %57, %58 : vector<32x32xf32>
    %60 = vector.extract_strided_slice %6 {offsets = [0, 0], sizes = [128, 16], strides = [1, 1]} : vector<128x32xf32> to vector<128x16xf32>
    %cst_21 = arith.constant dense<0xFF800000> : vector<128xf32>
    %61 = vector.multi_reduction <maximumf>, %60, %cst_21 [1] : vector<128x16xf32> to vector<128xf32>
    %62 = vector.shape_cast %61 : vector<128xf32> to vector<128x1xf32>
    %63 = vector.broadcast %62 : vector<128x1xf32> to vector<128x16xf32>
    %64 = arith.subf %60, %63 : vector<128x16xf32>
    %65 = math.exp %64 : vector<128x16xf32>
    %cst_22 = arith.constant dense<0.000000e+00> : vector<128xf32>
    %66 = vector.multi_reduction <add>, %65, %cst_22 [1] : vector<128x16xf32> to vector<128xf32>
    %67 = vector.shape_cast %66 : vector<128xf32> to vector<128x1xf32>
    %68 = tpu.reciprocal %67 : vector<128x1xf32> -> vector<128x1xf32>
    %69 = vector.broadcast %68 : vector<128x1xf32> to vector<128x16xf32>
    %70 = arith.mulf %65, %69 : vector<128x16xf32>
    %71 = vector.extract_strided_slice %7 {offsets = [0, 0], sizes = [128, 16], strides = [1, 1]} : vector<128x32xf32> to vector<128x16xf32>
    %72 = vector.extract_strided_slice %20 {offsets = [0, 0], sizes = [32, 16], strides = [1, 1]} : vector<32x32xf32> to vector<32x16xf32>
    %73 = vector.extract_strided_slice %70 {offsets = [0, 0], sizes = [32, 16], strides = [1, 1]} : vector<128x16xf32> to vector<32x16xf32>
    %74 = vector.extract_strided_slice %71 {offsets = [0, 0], sizes = [32, 16], strides = [1, 1]} : vector<128x16xf32> to vector<32x16xf32>
    %cst_23 = arith.constant dense<0.000000e+00> : vector<16x16xf32>
    %75 = tpu.matmul %73, %72, %cst_23 {dimension_numbers = #tpu.dot_dimension_numbers<[0], [0], [1], [1], [0, 1, 1, 1], [], []>} : vector<32x16xf32>, vector<32x16xf32>, vector<16x16xf32> -> vector<16x16xf32>
    %cst_24 = arith.constant dense<0.000000e+00> : vector<32x16xf32>
    %76 = tpu.matmul %74, %75, %cst_24 {dimension_numbers = #tpu.dot_dimension_numbers<[1], [0], [0], [1], [0, 0, 1, 1], [], []>} : vector<32x16xf32>, vector<16x16xf32>, vector<32x16xf32> -> vector<32x16xf32>
    %77 = vector.extract_strided_slice %33 {offsets = [0, 0], sizes = [32, 16], strides = [1, 1]} : vector<32x32xf32> to vector<32x16xf32>
    %78 = vector.extract_strided_slice %70 {offsets = [32, 0], sizes = [32, 16], strides = [1, 1]} : vector<128x16xf32> to vector<32x16xf32>
    %79 = vector.extract_strided_slice %71 {offsets = [32, 0], sizes = [32, 16], strides = [1, 1]} : vector<128x16xf32> to vector<32x16xf32>
    %cst_25 = arith.constant dense<0.000000e+00> : vector<16x16xf32>
    %80 = tpu.matmul %78, %77, %cst_25 {dimension_numbers = #tpu.dot_dimension_numbers<[0], [0], [1], [1], [0, 1, 1, 1], [], []>} : vector<32x16xf32>, vector<32x16xf32>, vector<16x16xf32> -> vector<16x16xf32>
    %cst_26 = arith.constant dense<0.000000e+00> : vector<32x16xf32>
    %81 = tpu.matmul %79, %80, %cst_26 {dimension_numbers = #tpu.dot_dimension_numbers<[1], [0], [0], [1], [0, 0, 1, 1], [], []>} : vector<32x16xf32>, vector<16x16xf32>, vector<32x16xf32> -> vector<32x16xf32>
    %82 = vector.extract_strided_slice %46 {offsets = [0, 0], sizes = [32, 16], strides = [1, 1]} : vector<32x32xf32> to vector<32x16xf32>
    %83 = vector.extract_strided_slice %70 {offsets = [64, 0], sizes = [32, 16], strides = [1, 1]} : vector<128x16xf32> to vector<32x16xf32>
    %84 = vector.extract_strided_slice %71 {offsets = [64, 0], sizes = [32, 16], strides = [1, 1]} : vector<128x16xf32> to vector<32x16xf32>
    %cst_27 = arith.constant dense<0.000000e+00> : vector<16x16xf32>
    %85 = tpu.matmul %83, %82, %cst_27 {dimension_numbers = #tpu.dot_dimension_numbers<[0], [0], [1], [1], [0, 1, 1, 1], [], []>} : vector<32x16xf32>, vector<32x16xf32>, vector<16x16xf32> -> vector<16x16xf32>
    %cst_28 = arith.constant dense<0.000000e+00> : vector<32x16xf32>
    %86 = tpu.matmul %84, %85, %cst_28 {dimension_numbers = #tpu.dot_dimension_numbers<[1], [0], [0], [1], [0, 0, 1, 1], [], []>} : vector<32x16xf32>, vector<16x16xf32>, vector<32x16xf32> -> vector<32x16xf32>
    %87 = vector.extract_strided_slice %59 {offsets = [0, 0], sizes = [32, 16], strides = [1, 1]} : vector<32x32xf32> to vector<32x16xf32>
    %88 = vector.extract_strided_slice %70 {offsets = [96, 0], sizes = [32, 16], strides = [1, 1]} : vector<128x16xf32> to vector<32x16xf32>
    %89 = vector.extract_strided_slice %71 {offsets = [96, 0], sizes = [32, 16], strides = [1, 1]} : vector<128x16xf32> to vector<32x16xf32>
    %cst_29 = arith.constant dense<0.000000e+00> : vector<16x16xf32>
    %90 = tpu.matmul %88, %87, %cst_29 {dimension_numbers = #tpu.dot_dimension_numbers<[0], [0], [1], [1], [0, 1, 1, 1], [], []>} : vector<32x16xf32>, vector<32x16xf32>, vector<16x16xf32> -> vector<16x16xf32>
    %cst_30 = arith.constant dense<0.000000e+00> : vector<32x16xf32>
    %91 = tpu.matmul %89, %90, %cst_30 {dimension_numbers = #tpu.dot_dimension_numbers<[1], [0], [0], [1], [0, 0, 1, 1], [], []>} : vector<32x16xf32>, vector<16x16xf32>, vector<32x16xf32> -> vector<32x16xf32>
    %92 = tpu.concatenate %76, %81, %86, %91 in 0 : vector<32x16xf32>, vector<32x16xf32>, vector<32x16xf32>, vector<32x16xf32> -> vector<128x16xf32>
    %cst_31 = arith.constant dense<0.000000e+00> : vector<8x16xf32>
    %93 = tpu.matmul %1, %92, %cst_31 {dimension_numbers = #tpu.dot_dimension_numbers<[1], [0], [0], [1], [0, 0, 1, 1], [], []>} : vector<8x128xf32>, vector<128x16xf32>, vector<8x16xf32> -> vector<8x16xf32>
    %94 = vector.broadcast %2 : vector<8x1xf32> to vector<8x16xf32>
    %95 = arith.addf %93, %94 : vector<8x16xf32>
    %96 = arith.mulf %95, %95 : vector<8x16xf32>
    %cst_32 = arith.constant dense<0.000000e+00> : vector<16xf32>
    %97 = vector.multi_reduction <add>, %96, %cst_32 [0] : vector<8x16xf32> to vector<16xf32>
    %98 = vector.shape_cast %97 : vector<16xf32> to vector<1x16xf32>
    %cst_33 = arith.constant 1.000000e-24 : f32
    %99 = vector.broadcast %cst_33 : f32 to vector<1x16xf32>
    %100 = arith.maximumf %98, %99 : vector<1x16xf32>
    %101 = math.rsqrt %100 : vector<1x16xf32>
    %102 = vector.broadcast %101 : vector<1x16xf32> to vector<8x16xf32>
    %103 = arith.mulf %95, %102 : vector<8x16xf32>
    %104 = vector.broadcast %3 : vector<8x1xf32> to vector<8x16xf32>
    %105 = arith.mulf %103, %104 : vector<8x16xf32>
    %cst_34 = arith.constant 2.82842708 : f32
    %106 = vector.broadcast %cst_34 : f32 to vector<8x16xf32>
    %107 = arith.mulf %105, %106 : vector<8x16xf32>
    %c0_35 = arith.constant 0 : index
    %c0_36 = arith.constant 0 : index
    %108 = vector.load %arg6[%c0_35, %c0_36] : memref<8x32xf32, #tpu.memory_space<vmem>>, vector<8x16xf32>
    tpu.vector_store %arg6[%c0_35, %c0_36], %107 {strides = array<i32>} : memref<8x32xf32, #tpu.memory_space<vmem>>, vector<8x16xf32>,
    %109 = vector.extract_strided_slice %6 {offsets = [0, 16], sizes = [128, 16], strides = [1, 1]} : vector<128x32xf32> to vector<128x16xf32>
    %cst_37 = arith.constant dense<0xFF800000> : vector<128xf32>
    %110 = vector.multi_reduction <maximumf>, %109, %cst_37 [1] : vector<128x16xf32> to vector<128xf32>
    %111 = vector.shape_cast %110 : vector<128xf32> to vector<128x1xf32>
    %112 = vector.broadcast %111 : vector<128x1xf32> to vector<128x16xf32>
    %113 = arith.subf %109, %112 : vector<128x16xf32>
    %114 = math.exp %113 : vector<128x16xf32>
    %cst_38 = arith.constant dense<0.000000e+00> : vector<128xf32>
    %115 = vector.multi_reduction <add>, %114, %cst_38 [1] : vector<128x16xf32> to vector<128xf32>
    %116 = vector.shape_cast %115 : vector<128xf32> to vector<128x1xf32>
    %117 = tpu.reciprocal %116 : vector<128x1xf32> -> vector<128x1xf32>
    %118 = vector.broadcast %117 : vector<128x1xf32> to vector<128x16xf32>
    %119 = arith.mulf %114, %118 : vector<128x16xf32>
    %120 = vector.extract_strided_slice %7 {offsets = [0, 16], sizes = [128, 16], strides = [1, 1]} : vector<128x32xf32> to vector<128x16xf32>
    %121 = vector.extract_strided_slice %20 {offsets = [0, 16], sizes = [32, 16], strides = [1, 1]} : vector<32x32xf32> to vector<32x16xf32>
    %122 = vector.extract_strided_slice %119 {offsets = [0, 0], sizes = [32, 16], strides = [1, 1]} : vector<128x16xf32> to vector<32x16xf32>
    %123 = vector.extract_strided_slice %120 {offsets = [0, 0], sizes = [32, 16], strides = [1, 1]} : vector<128x16xf32> to vector<32x16xf32>
    %cst_39 = arith.constant dense<0.000000e+00> : vector<16x16xf32>
    %124 = tpu.matmul %122, %121, %cst_39 {dimension_numbers = #tpu.dot_dimension_numbers<[0], [0], [1], [1], [0, 1, 1, 1], [], []>} : vector<32x16xf32>, vector<32x16xf32>, vector<16x16xf32> -> vector<16x16xf32>
    %cst_40 = arith.constant dense<0.000000e+00> : vector<32x16xf32>
    %125 = tpu.matmul %123, %124, %cst_40 {dimension_numbers = #tpu.dot_dimension_numbers<[1], [0], [0], [1], [0, 0, 1, 1], [], []>} : vector<32x16xf32>, vector<16x16xf32>, vector<32x16xf32> -> vector<32x16xf32>
    %126 = vector.extract_strided_slice %33 {offsets = [0, 16], sizes = [32, 16], strides = [1, 1]} : vector<32x32xf32> to vector<32x16xf32>
    %127 = vector.extract_strided_slice %119 {offsets = [32, 0], sizes = [32, 16], strides = [1, 1]} : vector<128x16xf32> to vector<32x16xf32>
    %128 = vector.extract_strided_slice %120 {offsets = [32, 0], sizes = [32, 16], strides = [1, 1]} : vector<128x16xf32> to vector<32x16xf32>
    %cst_41 = arith.constant dense<0.000000e+00> : vector<16x16xf32>
    %129 = tpu.matmul %127, %126, %cst_41 {dimension_numbers = #tpu.dot_dimension_numbers<[0], [0], [1], [1], [0, 1, 1, 1], [], []>} : vector<32x16xf32>, vector<32x16xf32>, vector<16x16xf32> -> vector<16x16xf32>
    %cst_42 = arith.constant dense<0.000000e+00> : vector<32x16xf32>
    %130 = tpu.matmul %128, %129, %cst_42 {dimension_numbers = #tpu.dot_dimension_numbers<[1], [0], [0], [1], [0, 0, 1, 1], [], []>} : vector<32x16xf32>, vector<16x16xf32>, vector<32x16xf32> -> vector<32x16xf32>
    %131 = vector.extract_strided_slice %46 {offsets = [0, 16], sizes = [32, 16], strides = [1, 1]} : vector<32x32xf32> to vector<32x16xf32>
    %132 = vector.extract_strided_slice %119 {offsets = [64, 0], sizes = [32, 16], strides = [1, 1]} : vector<128x16xf32> to vector<32x16xf32>
    %133 = vector.extract_strided_slice %120 {offsets = [64, 0], sizes = [32, 16], strides = [1, 1]} : vector<128x16xf32> to vector<32x16xf32>
    %cst_43 = arith.constant dense<0.000000e+00> : vector<16x16xf32>
    %134 = tpu.matmul %132, %131, %cst_43 {dimension_numbers = #tpu.dot_dimension_numbers<[0], [0], [1], [1], [0, 1, 1, 1], [], []>} : vector<32x16xf32>, vector<32x16xf32>, vector<16x16xf32> -> vector<16x16xf32>
    %cst_44 = arith.constant dense<0.000000e+00> : vector<32x16xf32>
    %135 = tpu.matmul %133, %134, %cst_44 {dimension_numbers = #tpu.dot_dimension_numbers<[1], [0], [0], [1], [0, 0, 1, 1], [], []>} : vector<32x16xf32>, vector<16x16xf32>, vector<32x16xf32> -> vector<32x16xf32>
    %136 = vector.extract_strided_slice %59 {offsets = [0, 16], sizes = [32, 16], strides = [1, 1]} : vector<32x32xf32> to vector<32x16xf32>
    %137 = vector.extract_strided_slice %119 {offsets = [96, 0], sizes = [32, 16], strides = [1, 1]} : vector<128x16xf32> to vector<32x16xf32>
    %138 = vector.extract_strided_slice %120 {offsets = [96, 0], sizes = [32, 16], strides = [1, 1]} : vector<128x16xf32> to vector<32x16xf32>
    %cst_45 = arith.constant dense<0.000000e+00> : vector<16x16xf32>
    %139 = tpu.matmul %137, %136, %cst_45 {dimension_numbers = #tpu.dot_dimension_numbers<[0], [0], [1], [1], [0, 1, 1, 1], [], []>} : vector<32x16xf32>, vector<32x16xf32>, vector<16x16xf32> -> vector<16x16xf32>
    %cst_46 = arith.constant dense<0.000000e+00> : vector<32x16xf32>
    %140 = tpu.matmul %138, %139, %cst_46 {dimension_numbers = #tpu.dot_dimension_numbers<[1], [0], [0], [1], [0, 0, 1, 1], [], []>} : vector<32x16xf32>, vector<16x16xf32>, vector<32x16xf32> -> vector<32x16xf32>
    %141 = tpu.concatenate %125, %130, %135, %140 in 0 : vector<32x16xf32>, vector<32x16xf32>, vector<32x16xf32>, vector<32x16xf32> -> vector<128x16xf32>
    %cst_47 = arith.constant dense<0.000000e+00> : vector<8x16xf32>
    %142 = tpu.matmul %1, %141, %cst_47 {dimension_numbers = #tpu.dot_dimension_numbers<[1], [0], [0], [1], [0, 0, 1, 1], [], []>} : vector<8x128xf32>, vector<128x16xf32>, vector<8x16xf32> -> vector<8x16xf32>
    %143 = vector.broadcast %2 : vector<8x1xf32> to vector<8x16xf32>
    %144 = arith.addf %142, %143 : vector<8x16xf32>
    %145 = arith.mulf %144, %144 : vector<8x16xf32>
    %cst_48 = arith.constant dense<0.000000e+00> : vector<16xf32>
    %146 = vector.multi_reduction <add>, %145, %cst_48 [0] : vector<8x16xf32> to vector<16xf32>
    %147 = vector.shape_cast %146 : vector<16xf32> to vector<1x16xf32>
    %cst_49 = arith.constant 1.000000e-24 : f32
    %148 = vector.broadcast %cst_49 : f32 to vector<1x16xf32>
    %149 = arith.maximumf %147, %148 : vector<1x16xf32>
    %150 = math.rsqrt %149 : vector<1x16xf32>
    %151 = vector.broadcast %150 : vector<1x16xf32> to vector<8x16xf32>
    %152 = arith.mulf %144, %151 : vector<8x16xf32>
    %153 = vector.broadcast %3 : vector<8x1xf32> to vector<8x16xf32>
    %154 = arith.mulf %152, %153 : vector<8x16xf32>
    %cst_50 = arith.constant 2.82842708 : f32
    %155 = vector.broadcast %cst_50 : f32 to vector<8x16xf32>
    %156 = arith.mulf %154, %155 : vector<8x16xf32>
    %c0_51 = arith.constant 0 : index
    %c16 = arith.constant 16 : index
    %157 = vector.load %arg6[%c0_51, %c16] : memref<8x32xf32, #tpu.memory_space<vmem>>, vector<8x16xf32>
    tpu.vector_store %arg6[%c0_51, %c16], %156 {strides = array<i32>} : memref<8x32xf32, #tpu.memory_space<vmem>>, vector<8x16xf32>,
    return
  }
  func.func @transform_0(%arg0: i32) -> (i32, i32) {
    %c0_i32 = arith.constant 0 : i32
    %c0_i32_0 = arith.constant 0 : i32
    return %c0_i32, %arg0 : i32, i32
  }
  func.func @transform_1(%arg0: i32) -> (i32, i32) {
    %c0_i32 = arith.constant 0 : i32
    %c0_i32_0 = arith.constant 0 : i32
    %c0_i32_1 = arith.constant 0 : i32
    return %c0_i32, %c0_i32_0 : i32, i32
  }
  func.func @transform_2(%arg0: i32) -> (i32, i32) {
    %c0_i32 = arith.constant 0 : i32
    %c0_i32_0 = arith.constant 0 : i32
    %c0_i32_1 = arith.constant 0 : i32
    return %c0_i32, %c0_i32_0 : i32, i32
  }
  func.func @transform_3(%arg0: i32) -> (i32, i32) {
    %c0_i32 = arith.constant 0 : i32
    %c0_i32_0 = arith.constant 0 : i32
    %c0_i32_1 = arith.constant 0 : i32
    return %c0_i32, %c0_i32_0 : i32, i32
  }
  func.func @transform_4(%arg0: i32) -> (i32, i32) {
    %c0_i32 = arith.constant 0 : i32
    %c0_i32_0 = arith.constant 0 : i32
    %c0_i32_1 = arith.constant 0 : i32
    return %c0_i32, %c0_i32_0 : i32, i32
  }
  func.func @transform_5(%arg0: i32) -> (i32, i32) {
    %c0_i32 = arith.constant 0 : i32
    %c0_i32_0 = arith.constant 0 : i32
    return %c0_i32, %arg0 : i32, i32
  }
}

</mosaic_0001>

<bundles_post_ra>
// kernel: tpu_custom_call.1
= control target key start
LH: loop header
LB: loop body
LE: loop exit
PB: predicated region body
PF: predicated region fallthrough
CT: control target
= control target key end

     0   :  { %10 = vsyncpa [#allocation3], 0  ;;  %s5112_s0 = inlined_call_operand.vmem [shape: f32[8,32], index: 0, kind: input, shape index: {}]   ;;  %s5113_s1 = inlined_call_operand.hbm [shape: f32[8,384], index: 1, kind: input, shape index: {}]   ;;  %s5114_s2 = inlined_call_operand.vmem [shape: f32[8,128], index: 2, kind: input, shape index: {}]   ;;  %s5115_s3 = inlined_call_operand.vmem [shape: f32[8,1], index: 3, kind: input, shape index: {}]   ;;  %s5116_s4 = inlined_call_operand.vmem [shape: f32[8,1], index: 4, kind: input, shape index: {}]   ;;  %s5117_s5 = inlined_call_operand.hbm [shape: f32[8,32], index: 5, kind: output, shape index: {}]  }
   0x1   :  { %11 = vsyncpa [#allocation4], 0  ;;  %s4217_s18 = smov [#allocation2]   ;;  %s4169_s22 = scalar_lea.hbm %s5113_s1, 384 }
   0x2   :  { %s20_s19 = sshll.u32 %s4217_s18, 4  ;;  %p4170_p0 = scmp.ne.s32.totalorder %s5113_s1, %s4169_s22  ;;  %s21_s19 = int_to_ptr.vmem [resolvable:$true] %s20_s19 }
   0x3   :  { %p4173_p1 = scmp.lt.u32.totalorder %s4169_s22, %s5113_s1 }
   0x5   :  { %p4175_p2 = pnand %p4173_p1, %p4170_p0 }
   0x7   :  { %4178 = shalt.err (!%p4175_p2)
}
   0x8   :  { %s4179_s27 = scalar_lea.vmem %s21_s19, 384  ;;  %p4184_p4 = scmp.lt.s32.totalorder %s21_s19, %s21_s19 }
   0x9   :  { %p4180_p3 = scmp.ne.s32.totalorder %s21_s19, %s4179_s27  ;;  %p4185_p5 = scmp.lt.s32.totalorder %s4179_s27, %s4179_s27 }
   0xb   :  { %p4186_p6 = por %p4185_p5, %p4184_p4 }
   0xd   :  { %p4187_p7 = pnand %p4186_p6, %p4180_p3 }
   0xf   :  { %4190 = shalt.err (!%p4187_p7)
}
  0x10   :  { %23 = dma.hbm_to_vmem [thread:$0]  %s5113_s1, 384, %s21_s19, [#allocation3]  }
  0x11   :  { %4213 = dma.done.wait [#allocation3], 384  }
  0x12   :  { %4214 = vsyncadd [#allocation3], 4294966912  ;;  %v37_v0 = vld [vmem:[#allocation2] sm:$0xff]  ;;  %v38_v2 = vld [vmem:[#allocation2 + $0x8] sm:$0xff]  ;;  %vm136_vm0 = vcmask 64512   ;;  %vm586_vm1 = vcmask 261120  }
  0x13   :  { %40 = vxpose.xlu0.b32.start.end [1/1] (short) %v37_v0, 128  ;;  %v33_v1 = vld [vmem:[%s5112_s0] sm:$0xff]  ;;  %vm775_vm2 = vcmask 130048   ;;  %vm1886_vm3 = vcmask 261248   ;;  %s4218_s0 = smov 112   ;;  %vm4220_vm4 = vmmov 0   ;;  %s4224_s10 = smov [#allocation5]  }
  0x14   :  { %3489 = vmatprep.subr.mxu0 %v33_v1  ;;  %3945 = vmatprep.subr.mxu1 %v33_v1  ;;  %s3205_s11 = sshll.u32 %s4224_s10, 4  ;;  %s3206_s11 = int_to_ptr.vmem [resolvable:$true] %s3205_s11 }
  0x15   :  { %3490 = vmatpush3.msra.mxu0 %v33_v1  ;;  %3946 = vmatpush3.msra.mxu1 %v33_v1  ;;  %s4191_s12 = scalar_lea.vmem %s3206_s11, 128  ;;  %p4196_p9 = scmp.lt.s32.totalorder %s3206_s11, %s3206_s11 }
  0x16   :  { %p4192_p8 = scmp.ne.s32.totalorder %s3206_s11, %s4191_s12  ;;  %p4197_p10 = scmp.lt.s32.totalorder %s4191_s12, %s4191_s12 }
  0x18   :  { %p4198_p11 = por %p4197_p10, %p4196_p9 }
  0x1a   :  { %p4199_p12 = pnand %p4198_p11, %p4192_p8 }
  0x50   :  { %72 = vxpose.xlu0.b32.start.end [1/1] (short) %v38_v2, 128 }
  0x93   :  { %v56_v3 = vpop.trf.xlu0 }
  0x94   :  { %3491 = vmatprep.mubr.msk.f32.mxu0 %vm136_vm0, %v56_v3 }
  0x97   :  { %v57_v4 = vpop.trf.xlu0 }
  0x98   :  { %3492 = vmatmul.mubr.msk.f32.vlgmr.msra.gmra.mrb[0].mxu0 %vm136_vm0, %v57_v4 }
  0x9b   :  { %v58_v5 = vpop.trf.xlu0 }
  0x9c   :  { %3494 = vmatprep.mubr.msk.f32.mxu0 %vm136_vm0, %v58_v5 }
  0x9f   :  { %v59_v6 = vpop.trf.xlu0 }
  0xa0   :  { %3495 = vmatmul.mubr.msk.f32.gmra.mrb[2].mxu0 %vm136_vm0, %v59_v6 }
  0xa3   :  { %v60_v7 = vpop.trf.xlu0 }
  0xa4   :  { %3497 = vmatprep.mubr.msk.f32.mxu0 %vm136_vm0, %v60_v7 }
  0xa7   :  { %v61_v8 = vpop.trf.xlu0 }
  0xa8   :  { %3498 = vmatmul.mubr.msk.f32.gmra.mrb[4].mxu0 %vm136_vm0, %v61_v8 }
  0xab   :  { %v62_v9 = vpop.trf.xlu0 }
  0xac   :  { %3500 = vmatprep.mubr.msk.f32.mxu0 %vm136_vm0, %v62_v9 }
  0xaf   :  { %v63_v10 = vpop.trf.xlu0 }
  0xb0   :  { %3501 = vmatmul.mubr.msk.f32.gmra.mrb[6].mxu0 %vm136_vm0, %v63_v10 }
  0xb3   :  { %v64_v11 = vpop.trf.xlu0 }
  0xb4   :  { %3503 = vmatprep.mubr.msk.f32.mxu0 %vm136_vm0, %v64_v11 }
  0xb7   :  { %v65_v12 = vpop.trf.xlu0 }
  0xb8   :  { %3504 = vmatmul.mubr.msk.f32.gmra.mrb[8].mxu0 %vm136_vm0, %v65_v12 }
  0xbb   :  { %v66_v13 = vpop.trf.xlu0 }
  0xbc   :  { %3506 = vmatprep.mubr.msk.f32.mxu0 %vm136_vm0, %v66_v13 }
  0xbf   :  { %v67_v14 = vpop.trf.xlu0 }
  0xc0   :  { %3507 = vmatmul.mubr.msk.f32.gmra.mrb[10].mxu0 %vm136_vm0, %v67_v14 }
  0xc3   :  { %v68_v15 = vpop.trf.xlu0 }
  0xc4   :  { %3509 = vmatprep.mubr.msk.f32.mxu0 %vm136_vm0, %v68_v15 }
  0xc7   :  { %v69_v16 = vpop.trf.xlu0 }
  0xc8   :  { %3510 = vmatmul.mubr.msk.f32.gmra.mrb[12].mxu0 %vm136_vm0, %v69_v16 }
  0xcb   :  { %v70_v17 = vpop.trf.xlu0 }
  0xcc   :  { %3512 = vmatprep.mubr.msk.f32.mxu0 %vm136_vm0, %v70_v17 }
  0xcf   :  { %v71_v18 = vpop.trf.xlu0 }
  0xd0   :  { %3513 = vmatmul.mubr.msk.f32.gmra.mrb[14].mxu0 %vm136_vm0, %v71_v18 }
  0xd3   :  { %v88_v19 = vpop.trf.xlu0 }
  0xd4   :  { %3515 = vmatprep.mubr.msk.f32.mxu0 %vm136_vm0, %v88_v19 }
  0xd7   :  { %v89_v20 = vpop.trf.xlu0 }
  0xd8   :  { %3516 = vmatmul.mubr.msk.f32.gmra.mrb[16].mxu0 %vm136_vm0, %v89_v20 }
  0xdb   :  { %v90_v21 = vpop.trf.xlu0 }
  0xdc   :  { %3518 = vmatprep.mubr.msk.f32.mxu0 %vm136_vm0, %v90_v21 }
  0xdf   :  { %v91_v22 = vpop.trf.xlu0 }
  0xe0   :  { %3519 = vmatmul.mubr.msk.f32.gmra.mrb[18].mxu0 %vm136_vm0, %v91_v22 }
  0xe3   :  { %v92_v23 = vpop.trf.xlu0 }
  0xe4   :  { %3521 = vmatprep.mubr.msk.f32.mxu0 %vm136_vm0, %v92_v23 }
  0xe7   :  { %v93_v24 = vpop.trf.xlu0 }
  0xe8   :  { %3522 = vmatmul.mubr.msk.f32.gmra.mrb[20].mxu0 %vm136_vm0, %v93_v24 }
  0xeb   :  { %v94_v25 = vpop.trf.xlu0 }
  0xec   :  { %3524 = vmatprep.mubr.msk.f32.mxu0 %vm136_vm0, %v94_v25 }
  0xef   :  { %v95_v26 = vpop.trf.xlu0 }
  0xf0   :  { %3525 = vmatmul.mubr.msk.f32.gmra.mrb[22].mxu0 %vm136_vm0, %v95_v26 }
 0x16b   :  { %v3493_v27 = vpop.f32.mrb[0].mxu0 }
 0x16c   :  { %v588_v28 = vsel %vm586_vm1, %v3493_v27, -inf  ;;  %v347_v29 = vpop.f32.mrb[1].mxu0 }
 0x16d   :  { %v587_v30 = vsel %vm586_vm1, %v347_v29, -inf }
 0x16e   :  { %v591_v31 = vmax.f32 %v587_v30, %v588_v28 }
 0x173   :  { %v3496_v32 = vpop.f32.mrb[2].mxu0 }
 0x174   :  { %v590_v33 = vsel %vm586_vm1, %v3496_v32, -inf  ;;  %v357_v34 = vpop.f32.mrb[3].mxu0 }
 0x175   :  { %v589_v35 = vsel %vm586_vm1, %v357_v34, -inf }
 0x176   :  { %v592_v36 = vmax.f32 %v589_v35, %v590_v33 }
 0x178   :  { %v593_v37 = vmax.f32 %v591_v31, %v592_v36 }
 0x17a   :  { %v594_v38 = vrot.slane %v593_v37, 4 }
 0x17b   :  { %v3499_v39 = vpop.f32.mrb[4].mxu0 }
 0x17c   :  { %v595_v40 = vmax.f32 %v593_v37, %v594_v38  ;;  %v635_v41 = vsel %vm586_vm1, %v3499_v39, -inf  ;;  %v367_v42 = vpop.f32.mrb[5].mxu0 }
 0x17d   :  { %v634_v43 = vsel %vm586_vm1, %v367_v42, -inf }
 0x17e   :  { %v596_v44 = vrot.slane %v595_v40, 2  ;;  %v638_v45 = vmax.f32 %v634_v43, %v635_v41 }
 0x180   :  { %v597_v46 = vmax.f32 %v595_v40, %v596_v44 }
 0x182   :  { %v598_v47 = vrot.slane %v597_v46, 1 }
 0x183   :  { %v3502_v48 = vpop.f32.mrb[6].mxu0 }
 0x184   :  { %v599_v49 = vmax.f32 %v597_v46, %v598_v47  ;;  %v637_v50 = vsel %vm586_vm1, %v3502_v48, -inf  ;;  %v377_v51 = vpop.f32.mrb[7].mxu0 }
 0x185   :  { %v636_v52 = vsel %vm586_vm1, %v377_v51, -inf }
 0x186   :  { %v600_v53 = vsub.f32 %v347_v29, %v599_v49  ;;  %v601_v54 = vsub.f32 %v3493_v27, %v599_v49  ;;  %v602_v55 = vsub.f32 %v357_v34, %v599_v49  ;;  %v603_v56 = vsub.f32 %v3496_v32, %v599_v49 }
 0x187   :  { %v639_v57 = vmax.f32 %v636_v52, %v637_v50 }
 0x188   :  { %v604_v58 = vmul.f32 1.442695, %v600_v53  ;;  %v606_v59 = vmul.f32 1.442695, %v601_v54  ;;  %v608_v60 = vmul.f32 1.442695, %v602_v55 }
 0x189   :  { %v610_v61 = vmul.f32 1.442695, %v603_v56  ;;  %v640_v62 = vmax.f32 %v638_v45, %v639_v57 }
 0x18a   :  { %3997 = vpow2.f32 %v604_v58 }
 0x18b   :  { %3999 = vpow2.f32 %v606_v59  ;;  %v641_v63 = vrot.slane %v640_v62, 4  ;;  %v4302_v0 = vpop.f32.mrb[8].mxu0 }
 0x18c   :  { %4001 = vpow2.f32 %v608_v60  ;;  %v682_v1 = vsel %vm586_vm1, %v4302_v0, -inf  ;;  %v4306_v2 = vpop.f32.mrb[9].mxu0 }
 0x18d   :  { %4003 = vpow2.f32 %v610_v61  ;;  %v642_v3 = vmax.f32 %v640_v62, %v641_v63  ;;  %v681_v4 = vsel %vm586_vm1, %v4306_v2, -inf }
 0x18e   :  { %v685_v5 = vmax.f32 %v681_v4, %v682_v1 }
 0x18f   :  { %v643_v6 = vrot.slane %v642_v3, 2 }
 0x191   :  { %v644_v7 = vmax.f32 %v642_v3, %v643_v6 }
 0x193   :  { %v645_v8 = vrot.slane %v644_v7, 1  ;;  %v4310_v9 = vpop.f32.mrb[10].mxu0 }
 0x194   :  { %v4312_v10 = vpop.eup %3997  ;;  %v684_v11 = vsel %vm586_vm1, %v4310_v9, -inf  ;;  %v4316_v12 = vpop.f32.mrb[11].mxu0 }
 0x195   :  { %v4318_v13 = vpop.eup %3999  ;;  %v612_v14 = vsel %vm586_vm1, %v4312_v10, 0.0  ;;  %v646_v15 = vmax.f32 %v644_v7, %v645_v8  ;;  %v683_v16 = vsel %vm586_vm1, %v4316_v12, -inf }
 0x196   :  { %v4324_v17 = vpop.eup %4001  ;;  %v613_v18 = vsel %vm586_vm1, %v4318_v13, 0.0  ;;  %v686_v19 = vmax.f32 %v683_v16, %v684_v11 }
 0x197   :  { %v4328_v20 = vpop.eup %4003  ;;  %v614_v21 = vadd.f32 %v613_v18, %v612_v14  ;;  %v647_v22 = vsub.f32 %v367_v42, %v646_v15  ;;  %v648_v23 = vsub.f32 %v3499_v39, %v646_v15  ;;  %v615_v24 = vsel %vm586_vm1, %v4324_v17, 0.0 }
 0x198   :  { %v649_v25 = vsub.f32 %v377_v51, %v646_v15  ;;  %v650_v26 = vsub.f32 %v3502_v48, %v646_v15  ;;  %v687_v27 = vmax.f32 %v685_v5, %v686_v19  ;;  %v617_v31 = vsel %vm586_vm1, %v4328_v20, 0.0 }
 0x199   :  { %v616_v28 = vadd.f32 %v615_v24, %v614_v21  ;;  %v651_v29 = vmul.f32 1.442695, %v647_v22  ;;  %v653_v30 = vmul.f32 1.442695, %v648_v23 }
 0x19a   :  { %v655_v32 = vmul.f32 1.442695, %v649_v25  ;;  %v657_v33 = vmul.f32 1.442695, %v650_v26  ;;  %v688_v34 = vrot.slane %v687_v27, 4 }
 0x19b   :  { %v618_v35 = vadd.f32 %v617_v31, %v616_v28  ;;  %4005 = vpow2.f32 %v651_v29  ;;  %v4334_v36 = vpop.f32.mrb[12].mxu0 }
 0x19c   :  { %4007 = vpow2.f32 %v653_v30  ;;  %v689_v37 = vmax.f32 %v687_v27, %v688_v34  ;;  %v729_v38 = vsel %vm586_vm1, %v4334_v36, -inf  ;;  %v4338_v39 = vpop.f32.mrb[13].mxu0 }
 0x19d   :  { %v619_v40 = vrot.slane %v618_v35, 4  ;;  %4009 = vpow2.f32 %v655_v32  ;;  %v728_v41 = vsel %vm586_vm1, %v4338_v39, -inf }
 0x19e   :  { %4011 = vpow2.f32 %v657_v33  ;;  %v690_v42 = vrot.slane %v689_v37, 2  ;;  %v732_v43 = vmax.f32 %v728_v41, %v729_v38 }
 0x19f   :  { %v620_v44 = vadd.f32 %v619_v40, %v618_v35 }
 0x1a0   :  { %v691_v45 = vmax.f32 %v689_v37, %v690_v42 }
 0x1a1   :  { %v621_v46 = vrot.slane %v620_v44, 2 }
 0x1a2   :  { %v692_v47 = vrot.slane %v691_v45, 1 }
 0x1a3   :  { %v622_v48 = vadd.f32 %v621_v46, %v620_v44  ;;  %v4342_v49 = vpop.f32.mrb[14].mxu0 }
 0x1a4   :  { %v693_v50 = vmax.f32 %v691_v45, %v692_v47  ;;  %v731_v51 = vsel %vm586_vm1, %v4342_v49, -inf  ;;  %v4346_v52 = vpop.f32.mrb[15].mxu0 }
 0x1a5   :  { %v4348_v53 = vpop.eup %4005  ;;  %v623_v54 = vrot.slane %v622_v48, 1  ;;  %v730_v55 = vsel %vm586_vm1, %v4346_v52, -inf }
 0x1a6   :  { %v4352_v56 = vpop.eup %4007  ;;  %v659_v57 = vsel %vm586_vm1, %v4348_v53, 0.0  ;;  %v694_v58 = vsub.f32 %v4306_v2, %v693_v50  ;;  %v695_v59 = vsub.f32 %v4302_v0, %v693_v50  ;;  %v696_v60 = vsub.f32 %v4316_v12, %v693_v50 }
 0x1a7   :  { %v4359_v61 = vpop.eup %4009  ;;  %v624_v62 = vadd.f32 %v623_v54, %v622_v48  ;;  %v660_v63 = vsel %vm586_vm1, %v4352_v56, 0.0  ;;  %v697_v1 = vsub.f32 %v4310_v9, %v693_v50  ;;  %v733_v3 = vmax.f32 %v730_v55, %v731_v51 }
 0x1a8   :  { %v4364_v4 = vpop.eup %4011  ;;  %v661_v5 = vadd.f32 %v660_v63, %v659_v57  ;;  %v698_v6 = vmul.f32 1.442695, %v694_v58  ;;  %v700_v7 = vmul.f32 1.442695, %v695_v59  ;;  %v662_v0 = vsel %vm586_vm1, %v4359_v61, 0.0 }
 0x1a9   :  { %4013 = vrcp.f32 %v624_v62  ;;  %v702_v2 = vmul.f32 1.442695, %v696_v60  ;;  %v704_v8 = vmul.f32 1.442695, %v697_v1  ;;  %v734_v12 = vmax.f32 %v732_v43, %v733_v3 }
 0x1aa   :  { %v663_v11 = vadd.f32 %v662_v0, %v661_v5  ;;  %4015 = vpow2.f32 %v698_v6  ;;  %v664_v14 = vsel %vm586_vm1, %v4364_v4, 0.0 }
 0x1ab   :  { %4017 = vpow2.f32 %v700_v7  ;;  %v4370_v9 = vpop.f32.mrb[16].mxu0  ;;  %v735_v16 = vrot.slane %v734_v12, 4 }
 0x1ac   :  { %v665_v15 = vadd.f32 %v664_v14, %v663_v11  ;;  %4019 = vpow2.f32 %v702_v2  ;;  %v4372_v18 = vpop.f32.mrb[17].mxu0  ;;  %v779_v19 = vsel %vm775_vm2, %v4370_v9, -inf }
 0x1ad   :  { %4021 = vpow2.f32 %v704_v8  ;;  %780 = vmax.xlane.f32.xlu1 %v779_v19  ;;  %v736_v22 = vmax.f32 %v734_v12, %v735_v16  ;;  %v776_v25 = vsel %vm775_vm2, %v4372_v18, -inf }
 0x1ae   :  { %v666_v21 = vrot.slane %v665_v15, 4 }
 0x1af   :  { %v737_v24 = vrot.slane %v736_v22, 2 }
 0x1b0   :  { %v667_v23 = vadd.f32 %v666_v21, %v665_v15 }
 0x1b1   :  { %777 = vmax.xlane.f32.xlu1 %v776_v25  ;;  %v738_v27 = vmax.f32 %v736_v22, %v737_v24 }
 0x1b2   :  { %v668_v26 = vrot.slane %v667_v23, 2 }
 0x1b3   :  { %v4014_v28 = vpop.eup %4013  ;;  %v4378_v29 = vpop.f32.mrb[18].mxu0  ;;  %v739_v32 = vrot.slane %v738_v27, 1 }
 0x1b4   :  { %v4380_v30 = vpop.eup %4015  ;;  %v669_v31 = vadd.f32 %v668_v26, %v667_v23  ;;  %v4382_v33 = vpop.f32.mrb[19].mxu0  ;;  %v626_v34 = vmul.f32 %v4014_v28, %v4312_v10  ;;  %v627_v35 = vmul.f32 %v4014_v28, %v4318_v13  ;;  %v785_v41 = vsel %vm775_vm2, %v4378_v29, -inf }
 0x1b5   :  { %v4386_v37 = vpop.eup %4017  ;;  %v706_v38 = vsel %vm586_vm1, %v4380_v30, 0.0  ;;  %v782_v40 = vsel %vm775_vm2, %v4382_v33, -inf  ;;  %v628_v42 = vmul.f32 %v4014_v28, %v4324_v17  ;;  %v740_v13 = vmax.f32 %v738_v27, %v739_v32 }
 0x1b6   :  { %v4395_v43 = vpop.eup %4019  ;;  %v670_v44 = vrot.slane %v669_v31, 1  ;;  %v707_v10 = vsel %vm586_vm1, %v4386_v37, 0.0  ;;  %783 = vmax.xlane.f32.xlu1 %v782_v40  ;;  %v4399_v45 = vmul.f32 0.17677669, %v626_v34  ;;  %v4405_v50 = vmul.f32 0.17677669, %v627_v35 }
 0x1b7   :  { %v4401_v46 = vpop.eup %4021  ;;  %v708_v47 = vadd.f32 %v707_v10, %v706_v38  ;;  %v709_v48 = vsel %vm586_vm1, %v4395_v43, 0.0  ;;  %v629_v17 = vmul.f32 %v4014_v28, %v4328_v20  ;;  %v741_v55 = vsub.f32 %v4338_v39, %v740_v13 }
 0x1b8   :  { %v671_v51 = vadd.f32 %v670_v44, %v669_v31  ;;  %v711_v54 = vsel %vm586_vm1, %v4401_v46, 0.0  ;;  %v742_v57 = vsub.f32 %v4334_v36, %v740_v13  ;;  %v743_v59 = vsub.f32 %v4346_v52, %v740_v13 }
 0x1b9   :  { %v710_v58 = vadd.f32 %v709_v48, %v708_v47  ;;  %v744_v60 = vsub.f32 %v4342_v49, %v740_v13  ;;  %v4416_v62 = vpack.c.bf16 %v4405_v50, %v4399_v45  ;;  %v745_v63 = vmul.f32 1.442695, %v741_v55 }
 0x1ba   :  { %4023 = vrcp.f32 %v671_v51  ;;  %v747_v20 = vmul.f32 1.442695, %v742_v57  ;;  %786 = vmax.xlane.f32.xlu1 %v785_v41  ;;  %v4418_v1 = vmul.f32 0.17677669, %v628_v42  ;;  %v749_v5 = vmul.f32 1.442695, %v743_v59 }
 0x1bb   :  { %v712_v3 = vadd.f32 %v711_v54, %v710_v58  ;;  %v751_v39 = vmul.f32 1.442695, %v744_v60  ;;  %3802 = vmatprep.subr.bf16.mxu1 %v4416_v62  ;;  %v4421_v36 = vmul.f32 0.17677669, %v629_v17  ;;  %4025 = vpow2.f32 %v745_v63 }
 0x1bc   :  { %4027 = vpow2.f32 %v747_v20 }
 0x1bd   :  { %v713_v52 = vrot.slane %v712_v3, 4  ;;  %v4427_v6 = vpack.c.bf16 %v4421_v36, %v4418_v1  ;;  %4029 = vpow2.f32 %v749_v5 }
 0x1be   :  { %4031 = vpow2.f32 %v751_v39 }
 0x1bf   :  { %v714_v0 = vadd.f32 %v713_v52, %v712_v3 }
 0x1c1   :  { %v715_v2 = vrot.slane %v714_v0, 2 }
 0x1c3   :  { %v716_v8 = vadd.f32 %v715_v2, %v714_v0 }
 0x1c4   :  { %v4024_v11 = vpop.eup %4023 }
 0x1c5   :  { %v717_v12 = vrot.slane %v716_v8, 1  ;;  %v673_v14 = vmul.f32 %v4024_v11, %v4348_v53  ;;  %v674_v15 = vmul.f32 %v4024_v11, %v4352_v56  ;;  %v675_v16 = vmul.f32 %v4024_v11, %v4359_v61  ;;  %v4026_v19 = vpop.eup %4025 }
 0x1c6   :  { %v676_v21 = vmul.f32 %v4024_v11, %v4364_v4  ;;  %v4028_v22 = vpop.eup %4027  ;;  %v753_v24 = vsel %vm586_vm1, %v4026_v19, 0.0 }
 0x1c7   :  { %v718_v23 = vadd.f32 %v717_v12, %v716_v8  ;;  %v4436_v25 = vmul.f32 0.17677669, %v673_v14  ;;  %v4438_v26 = vmul.f32 0.17677669, %v674_v15  ;;  %v4030_v27 = vpop.eup %4029  ;;  %v754_v28 = vsel %vm586_vm1, %v4028_v22, 0.0 }
 0x1c8   :  { %v4441_v31 = vmul.f32 0.17677669, %v675_v16  ;;  %v4443_v53 = vmul.f32 0.17677669, %v676_v21  ;;  %v4032_v56 = vpop.eup %4031  ;;  %v755_v61 = vadd.f32 %v754_v28, %v753_v24  ;;  %v756_v32 = vsel %vm586_vm1, %v4030_v27, 0.0 }
 0x1c9   :  { %4033 = vrcp.f32 %v718_v23  ;;  %v4447_v4 = vpack.c.bf16 %v4438_v26, %v4436_v25  ;;  %v758_v41 = vsel %vm586_vm1, %v4032_v56, 0.0 }
 0x1ca   :  { %v4452_v34 = vpack.c.bf16 %v4443_v53, %v4441_v31  ;;  %v757_v40 = vadd.f32 %v756_v32, %v755_v61 }
 0x1cc   :  { %v759_v42 = vadd.f32 %v758_v41, %v757_v40 }
 0x1ce   :  { %v760_v44 = vrot.slane %v759_v42, 4 }
 0x1d0   :  { %v761_v10 = vadd.f32 %v760_v44, %v759_v42 }
 0x1d2   :  { %v762_v47 = vrot.slane %v761_v10, 2 }
 0x1d3   :  { %v4034_v13 = vpop.eup %4033 }
 0x1d4   :  { %v720_v48 = vmul.f32 %v4034_v13, %v4380_v30  ;;  %v721_v17 = vmul.f32 %v4034_v13, %v4386_v37  ;;  %v722_v51 = vmul.f32 %v4034_v13, %v4395_v43  ;;  %v723_v54 = vmul.f32 %v4034_v13, %v4401_v46 }
 0x1d5   :  { %v763_v55 = vadd.f32 %v762_v47, %v761_v10 }
 0x1d6   :  { %v4463_v57 = vmul.f32 0.17677669, %v720_v48  ;;  %v4465_v58 = vmul.f32 0.17677669, %v721_v17  ;;  %v4467_v59 = vmul.f32 0.17677669, %v722_v51 }
 0x1d7   :  { %v764_v60 = vrot.slane %v763_v55, 1  ;;  %v4469_v63 = vmul.f32 0.17677669, %v723_v54 }
 0x1d8   :  { %v4473_v20 = vpack.c.bf16 %v4465_v58, %v4463_v57 }
 0x1d9   :  { %v765_v37 = vadd.f32 %v764_v60, %v763_v55  ;;  %v4479_v43 = vpack.c.bf16 %v4469_v63, %v4467_v59  ;;  %v4511_v55 = vpop.f32.mrb[20].mxu0  ;;  %v96_v60 = vpop.trf.xlu0 }
 0x1da   :  { %3527 = vmatprep.mubr.msk.f32.mxu0 %vm136_vm0, %v96_v60 }
 0x1db   :  { %4035 = vrcp.f32 %v765_v37  ;;  %v4513_v37 = vpop.f32.mrb[21].mxu0 }
 0x1e5   :  { %v4036_v3 = vpop.eup %4035 }
 0x1e6   :  { %v767_v5 = vmul.f32 %v4036_v3, %v4026_v19  ;;  %v768_v39 = vmul.f32 %v4036_v3, %v4028_v22  ;;  %v769_v52 = vmul.f32 %v4036_v3, %v4030_v27  ;;  %v770_v0 = vmul.f32 %v4036_v3, %v4032_v56  ;;  %v4516_v3 = vpop.f32.mrb[22].mxu0 }
 0x1e8   :  { %v4483_v2 = vmul.f32 0.17677669, %v767_v5  ;;  %v4485_v8 = vmul.f32 0.17677669, %v768_v39  ;;  %v4487_v11 = vmul.f32 0.17677669, %v769_v52  ;;  %v97_v5 = vpop.trf.xlu0 }
 0x1e9   :  { %v4489_v12 = vmul.f32 0.17677669, %v770_v0  ;;  %v4518_v39 = vpop.f32.mrb[23].mxu0  ;;  %3528 = vmatmul.mubr.msk.f32.gmra.mrb[24].mxu0 %vm136_vm0, %v97_v5 }
 0x1ea   :  { %5126 = vst [vmem:[#allocation8_spill] sm:$0xff] %v4487_v11  ;;  %v4493_v14 = vpack.c.bf16 %v4485_v8, %v4483_v2 }
 0x1eb   :  { %v4499_v16 = vpack.c.bf16 %v4489_v12, %v4487_v11 }
 0x1ec   :  { %v98_v52 = vpop.trf.xlu0 }
 0x1ed   :  { %3530 = vmatprep.mubr.msk.f32.mxu0 %vm136_vm0, %v98_v52 }
 0x1f0   :  { %v99_v0 = vpop.trf.xlu0 }
 0x1f1   :  { %3531 = vmatmul.mubr.msk.f32.gmra.mrb[26].mxu0 %vm136_vm0, %v99_v0 }
 0x23a   :  { %v781_v21 = vpop.xlane.xlu1 %780 }
 0x23b   :  { %v825_v22 = vsub.f32 %v4370_v9, %v781_v21  ;;  %v39_v21 = vld [vmem:[#allocation2 + $0x10] sm:$0xff] }
 0x23d   :  { %v842_v23 = vmul.f32 1.442695, %v825_v22  ;;  %v100_v22 = vpop.trf.xlu0 }
 0x23e   :  { %v778_v24 = vpop.xlane.xlu1 %777  ;;  %3533 = vmatprep.mubr.msk.f32.mxu0 %vm136_vm0, %v100_v22 }
 0x23f   :  { %4037 = vpow2.f32 %v842_v23  ;;  %v824_v27 = vsub.f32 %v4372_v18, %v778_v24 }
 0x241   :  { %v840_v28 = vmul.f32 1.442695, %v824_v27  ;;  %v101_v23 = vpop.trf.xlu0 }
 0x242   :  { %3534 = vmatmul.mubr.msk.f32.gmra.mrb[28].mxu0 %vm136_vm0, %v101_v23  ;;  %v791_v23 = vsel %vm775_vm2, %v4511_v55, -inf }
 0x243   :  { %4039 = vpow2.f32 %v840_v28  ;;  %v784_v56 = vpop.xlane.xlu1 %783 }
 0x244   :  { %v826_v61 = vsub.f32 %v4382_v33, %v784_v56 }
 0x245   :  { %v102_v24 = vpop.trf.xlu0 }
 0x246   :  { %v844_v42 = vmul.f32 1.442695, %v826_v61  ;;  %3536 = vmatprep.mubr.msk.f32.mxu0 %vm136_vm0, %v102_v24  ;;  %v797_v24 = vsel %vm775_vm2, %v4516_v3, -inf }
 0x247   :  { %v787_v32 = vpop.xlane.xlu1 %786 }
 0x248   :  { %v827_v40 = vsub.f32 %v4378_v29, %v787_v32 }
 0x249   :  { %v4038_v41 = vpop.eup %4037  ;;  %v103_v27 = vpop.trf.xlu0 }
 0x24a   :  { %v846_v44 = vmul.f32 1.442695, %v827_v40  ;;  %v875_v10 = vsel %vm775_vm2, %v4038_v41, 0.0  ;;  %3537 = vmatmul.mubr.msk.f32.gmra.mrb[30].mxu0 %vm136_vm0, %v103_v27 }
 0x24b   :  { %876 = vadd.xlane.f32.xlu1 %v875_v10 }
 0x24c   :  { %4041 = vpow2.f32 %v846_v44 }
 0x24d   :  { %v4040_v13 = vpop.eup %4039  ;;  %4043 = vpow2.f32 %v844_v42 }
 0x24e   :  { %v872_v47 = vsel %vm775_vm2, %v4040_v13, 0.0 }
 0x24f   :  { %873 = vadd.xlane.f32.xlu1 %v872_v47  ;;  %v788_v47 = vsel %vm775_vm2, %v4513_v37, -inf }
 0x256   :  { %v4042_v48 = vpop.eup %4041 }
 0x257   :  { %v881_v17 = vsel %vm775_vm2, %v4042_v48, 0.0  ;;  %v4044_v51 = vpop.eup %4043 }
 0x258   :  { %882 = vadd.xlane.f32.xlu1 %v881_v17  ;;  %v878_v54 = vsel %vm775_vm2, %v4044_v51, 0.0  ;;  %v794_v17 = vsel %vm775_vm2, %v4518_v39, -inf }
 0x25c   :  { %879 = vadd.xlane.f32.xlu1 %v878_v54 }
 0x28f   :  { %104 = vxpose.xlu1.b32.start.end [1/1] (short) %v39_v21, 128 }
 0x2d8   :  { %v877_v28 = vpop.xlane.xlu1 %876 }
 0x2dc   :  { %v874_v56 = vpop.xlane.xlu1 %873 }
 0x2dd   :  { %4045 = vrcp.f32 %v874_v56 }
 0x2de   :  { %4047 = vrcp.f32 %v877_v28 }
 0x2e5   :  { %v883_v61 = vpop.xlane.xlu1 %882 }
 0x2e7   :  { %v4046_v32 = vpop.eup %4045 }
 0x2e8   :  { %v936_v40 = vmul.f32 %v4046_v32, %v4040_v13  ;;  %v4048_v42 = vpop.eup %4047 }
 0x2e9   :  { %v880_v44 = vpop.xlane.xlu1 %879  ;;  %v937_v10 = vmul.f32 %v4048_v42, %v4038_v41 }
 0x2ea   :  { %4049 = vrcp.f32 %v880_v44  ;;  %952 = vxpose.xlu0.b32.start [1/4] (short) (narrow) %v936_v40, 16 }
 0x2eb   :  { %4051 = vrcp.f32 %v883_v61 }
 0x2ee   :  { %953 = vxpose.xlu0.b32.cont [2/4] (short) (narrow) %v937_v10, 16 }
 0x2f2   :  { %789 = vmax.xlane.f32.xlu1 %v788_v47 }
 0x2f4   :  { %v4050_v54 = vpop.eup %4049 }
 0x2f5   :  { %v938_v60 = vmul.f32 %v4050_v54, %v4044_v51  ;;  %v4052_v5 = vpop.eup %4051 }
 0x2f6   :  { %795 = vmax.xlane.f32.xlu1 %v794_v17  ;;  %v939_v13 = vmul.f32 %v4052_v5, %v4042_v48 }
 0x2f7   :  { %954 = vxpose.xlu0.b32.cont [3/4] (short) (narrow) %v938_v60, 16 }
 0x2fb   :  { %955 = vxpose.xlu0.b32.end [4/4] (short) (narrow) %v939_v13, 16 }
 0x30f   :  { %v120_v52 = vpop.trf.xlu1 }
 0x310   :  { %3539 = vmatprep.mubr.msk.f32.mxu0 %vm136_vm0, %v120_v52 }
 0x313   :  { %v121_v0 = vpop.trf.xlu1 }
 0x314   :  { %3540 = vmatmul.mubr.msk.f32.gmra.mrb[32].mxu0 %vm136_vm0, %v121_v0 }
 0x317   :  { %v122_v41 = vpop.trf.xlu1 }
 0x318   :  { %3542 = vmatprep.mubr.msk.f32.mxu0 %vm136_vm0, %v122_v41 }
 0x31b   :  { %v123_v21 = vpop.trf.xlu1 }
 0x31c   :  { %3543 = vmatmul.mubr.msk.f32.gmra.mrb[34].mxu0 %vm136_vm0, %v123_v21 }
 0x31f   :  { %v124_v22 = vpop.trf.xlu1 }
 0x320   :  { %3545 = vmatprep.mubr.msk.f32.mxu0 %vm136_vm0, %v124_v22 }
 0x323   :  { %v125_v51 = vpop.trf.xlu1 }
 0x324   :  { %3546 = vmatmul.mubr.msk.f32.gmra.mrb[36].mxu0 %vm136_vm0, %v125_v51 }
 0x327   :  { %v126_v48 = vpop.trf.xlu1 }
 0x328   :  { %792 = vmax.xlane.f32.xlu0 %v791_v23  ;;  %3548 = vmatprep.mubr.msk.f32.mxu0 %vm136_vm0, %v126_v48 }
 0x32b   :  { %v127_v27 = vpop.trf.xlu1 }
 0x32c   :  { %798 = vmax.xlane.f32.xlu0 %v797_v24  ;;  %3549 = vmatmul.mubr.msk.f32.gmra.mrb[38].mxu0 %vm136_vm0, %v127_v27 }
 0x32f   :  { %v128_v28 = vpop.trf.xlu1 }
 0x330   :  { %3551 = vmatprep.mubr.msk.f32.mxu1 %vm136_vm0, %v128_v28 }
 0x333   :  { %v129_v56 = vpop.trf.xlu1 }
 0x334   :  { %3552 = vmatmul.mubr.msk.f32.vlgmr.msra.gmra.mrb[0].mxu1 %vm136_vm0, %v129_v56 }
 0x335   :  { %3804 = vmatpush3.bf16.msra.mxu1 %v4416_v62  ;;  %v4553_v62 = vpop.f32.mrb[24].mxu0 }
 0x336   :  { %3806 = vmatprep.subr.bf16.mxu1 %v4427_v6  ;;  %v4555_v47 = vpop.f32.mrb[25].mxu0 }
 0x337   :  { %v130_v61 = vpop.trf.xlu1 }
 0x338   :  { %3554 = vmatprep.mubr.msk.f32.mxu1 %vm136_vm0, %v130_v61 }
 0x339   :  { %3808 = vmatpush3.bf16.msra.mxu1 %v4427_v6  ;;  %v4558_v6 = vpop.f32.mrb[26].mxu0 }
 0x33a   :  { %v4560_v17 = vpop.f32.mrb[27].mxu0 }
 0x33b   :  { %v131_v32 = vpop.trf.xlu1 }
 0x33c   :  { %3555 = vmatmul.mubr.msk.f32.gmra.mrb[2].mxu1 %vm136_vm0, %v131_v32 }
 0x33f   :  { %v132_v40 = vpop.trf.xlu1 }
 0x340   :  { %3557 = vmatprep.mubr.msk.f32.mxu1 %vm136_vm0, %v132_v40 }
 0x343   :  { %v133_v42 = vpop.trf.xlu1 }
 0x344   :  { %3558 = vmatmul.mubr.msk.f32.gmra.mrb[4].mxu1 %vm136_vm0, %v133_v42 }
 0x347   :  { %v134_v44 = vpop.trf.xlu1 }
 0x348   :  { %3560 = vmatprep.mubr.msk.f32.mxu1 %vm136_vm0, %v134_v44 }
 0x34b   :  { %v135_v10 = vpop.trf.xlu1 }
 0x34c   :  { %3561 = vmatmul.mubr.msk.f32.gmra.mrb[6].mxu1 %vm136_vm0, %v135_v10 }
 0x36f   :  { %v968_v54 = vpop.trf.xlu0 }
 0x370   :  { %3571 = vmatprep.mubr.msk.f32.mxu1 %vm586_vm1, %v968_v54  ;;  %v4578_v54 = vpop.f32.mrb[28].mxu0 }
 0x373   :  { %v969_v60 = vpop.trf.xlu0 }
 0x374   :  { %3572 = vmatmul.mubr.msk.f32.vlgmr.msra.gmra.mrb[8].mxu1 %vm586_vm1, %v969_v60  ;;  %v4580_v60 = vpop.f32.mrb[29].mxu0 }
 0x37f   :  { %v790_v5 = vpop.xlane.xlu1 %789 }
 0x380   :  { %v828_v13 = vsub.f32 %v4513_v37, %v790_v5  ;;  %v800_v5 = vsel %vm775_vm2, %v4555_v47, -inf }
 0x382   :  { %v848_v52 = vmul.f32 1.442695, %v828_v13  ;;  %v4584_v13 = vpop.f32.mrb[30].mxu0 }
 0x383   :  { %v796_v0 = vpop.xlane.xlu1 %795 }
 0x384   :  { %4053 = vpow2.f32 %v848_v52  ;;  %v830_v41 = vsub.f32 %v4518_v39, %v796_v0  ;;  %v4586_v52 = vpop.f32.mrb[31].mxu0  ;;  %v803_v0 = vsel %vm775_vm2, %v4553_v62, -inf }
 0x386   :  { %v852_v21 = vmul.f32 1.442695, %v830_v41  ;;  %v806_v41 = vsel %vm775_vm2, %v4560_v17, -inf }
 0x388   :  { %4055 = vpow2.f32 %v852_v21  ;;  %v809_v21 = vsel %vm775_vm2, %v4558_v6, -inf }
 0x38e   :  { %v4054_v22 = vpop.eup %4053 }
 0x38f   :  { %v884_v51 = vsel %vm775_vm2, %v4054_v22, 0.0 }
 0x390   :  { %885 = vadd.xlane.f32.xlu1 %v884_v51 }
 0x392   :  { %v4567_v48 = vpop.eup %4055 }
 0x393   :  { %v890_v23 = vsel %vm775_vm2, %v4567_v48, 0.0 }
 0x394   :  { %891 = vadd.xlane.f32.xlu1 %v890_v23 }
 0x3b5   :  { %v793_v24 = vpop.xlane.xlu0 %792 }
 0x3b6   :  { %v829_v27 = vsub.f32 %v4511_v55, %v793_v24 }
 0x3b8   :  { %v850_v28 = vmul.f32 1.442695, %v829_v27 }
 0x3b9   :  { %v799_v56 = vpop.xlane.xlu0 %798 }
 0x3ba   :  { %4057 = vpow2.f32 %v850_v28  ;;  %v831_v61 = vsub.f32 %v4516_v3, %v799_v56 }
 0x3bc   :  { %v854_v32 = vmul.f32 1.442695, %v831_v61 }
 0x3be   :  { %4059 = vpow2.f32 %v854_v32 }
 0x3c4   :  { %v4058_v40 = vpop.eup %4057 }
 0x3c5   :  { %v887_v42 = vsel %vm775_vm2, %v4058_v40, 0.0 }
 0x3c6   :  { %888 = vadd.xlane.f32.xlu0 %v887_v42 }
 0x3c8   :  { %v4574_v44 = vpop.eup %4059 }
 0x3c9   :  { %v893_v10 = vsel %vm775_vm2, %v4574_v44, 0.0 }
 0x3ca   :  { %894 = vadd.xlane.f32.xlu0 %v893_v10 }
 0x3ce   :  { %801 = vmax.xlane.f32.xlu0 %v800_v5 }
 0x3d2   :  { %804 = vmax.xlane.f32.xlu0 %v803_v0 }
 0x3d6   :  { %807 = vmax.xlane.f32.xlu0 %v806_v41 }
 0x3da   :  { %810 = vmax.xlane.f32.xlu0 %v809_v21 }
 0x3e7   :  { %v4594_v51 = vpop.f32.mrb[32].mxu0 }
 0x3e8   :  { %5127 = vst [vmem:[#allocation9_spill] sm:$0xff] %v4594_v51  ;;  %v4596_v23 = vpop.f32.mrb[33].mxu0 }
 0x3e9   :  { %5128 = vst [vmem:[#allocation10_spill] sm:$0xff] %v4596_v23  ;;  %3578 = vmatprep.mubr.msk.f32.mxu1 %vm775_vm2, %v4596_v23 }
 0x3ef   :  { %v4612_v42 = vpop.f32.mrb[34].mxu0 }
 0x3f0   :  { %5130 = vst [vmem:[#allocation12_spill] sm:$0xff] %v4612_v42  ;;  %v4614_v10 = vpop.f32.mrb[35].mxu0 }
 0x3f1   :  { %5131 = vst [vmem:[#allocation13_spill] sm:$0xff] %v4614_v10 }
 0x407   :  { %v4600_v24 = vpop.f32.mrb[0].mxu1 }
 0x408   :  { %v4602_v27 = vpop.f32.mrb[1].mxu1 }
 0x409   :  { %5129 = vst [vmem:[#allocation11_spill] sm:$0xff] %v4602_v27 }
 0x40f   :  { %v4604_v28 = vpop.f32.mrb[2].mxu1 }
 0x410   :  { %v4606_v56 = vpop.f32.mrb[3].mxu1 }
 0x417   :  { %v4608_v61 = vpop.f32.mrb[4].mxu1 }
 0x418   :  { %v4610_v32 = vpop.f32.mrb[5].mxu1 }
 0x41d   :  { %v886_v5 = vpop.xlane.xlu1 %885 }
 0x41e   :  { %4061 = vrcp.f32 %v886_v5 }
 0x41f   :  { %v4616_v0 = vpop.f32.mrb[6].mxu1 }
 0x420   :  { %v4618_v41 = vpop.f32.mrb[7].mxu1 }
 0x421   :  { %v892_v5 = vpop.xlane.xlu1 %891 }
 0x428   :  { %v4062_v21 = vpop.eup %4061 }
 0x429   :  { %v940_v19 = vmul.f32 %v4062_v21, %v4054_v22 }
 0x42b   :  { %1162 = vxpose.xlu1.b32.start [1/4] (short) (narrow) %v940_v19, 16 }
 0x447   :  { %v3573_v46 = vpop.f32.mrb[8].mxu1 }
 0x448   :  { %v1056_v38 = vpop.f32.mrb[9].mxu1 }
 0x449   :  { %v3809_v7 = vpack.c.bf16 %v3573_v46, %v1056_v38 }
 0x44b   :  { %3810 = vmatprep.subr.bf16.mxu1 %v3809_v7 }
 0x44c   :  { %3812 = vmatpush3.bf16.msra.mxu1 %v3809_v7 }
 0x44d   :  { %3814 = vmatprep.subr.bf16.mxu1 %v4447_v4 }
 0x44f   :  { %3579 = vmatmul.mubr.msk.f32.vlgmr.msra.gmra.mrb[10].mxu1 %vm775_vm2, %v4594_v51 }
 0x450   :  { %3816 = vmatpush3.bf16.msra.mxu1 %v4447_v4  ;;  %3581 = vmatprep.mubr.msk.f32.mxu1 %vm775_vm2, %v4614_v10 }
 0x451   :  { %3818 = vmatprep.subr.bf16.mxu1 %v4452_v34 }
 0x453   :  { %v889_v22 = vpop.xlane.xlu0 %888  ;;  %3582 = vmatmul.mubr.msk.f32.gmra.mrb[12].mxu1 %vm775_vm2, %v4612_v42 }
 0x454   :  { %4063 = vrcp.f32 %v889_v22  ;;  %3820 = vmatpush3.bf16.msra.mxu1 %v4452_v34 }
 0x455   :  { %4065 = vrcp.f32 %v892_v5 }
 0x457   :  { %v895_v7 = vpop.xlane.xlu0 %894 }
 0x458   :  { %4067 = vrcp.f32 %v895_v7 }
 0x45b   :  { %v802_v38 = vpop.xlane.xlu0 %801 }
 0x45c   :  { %v832_v46 = vsub.f32 %v4555_v47, %v802_v38 }
 0x45e   :  { %v4064_v4 = vpop.eup %4063  ;;  %v856_v19 = vmul.f32 1.442695, %v832_v46 }
 0x45f   :  { %v805_v21 = vpop.xlane.xlu0 %804  ;;  %v941_v15 = vmul.f32 %v4064_v4, %v4058_v40  ;;  %v4066_v30 = vpop.eup %4065 }
 0x460   :  { %4069 = vpow2.f32 %v856_v19  ;;  %v833_v35 = vsub.f32 %v4553_v62, %v805_v21  ;;  %v942_v22 = vmul.f32 %v4066_v30, %v4567_v48  ;;  %v4640_v21 = vpop.f32.mrb[36].mxu0 }
 0x461   :  { %1163 = vxpose.xlu1.b32.cont [2/4] (short) (narrow) %v941_v15, 16 }
 0x462   :  { %v858_v49 = vmul.f32 1.442695, %v833_v35  ;;  %v4068_v34 = vpop.eup %4067 }
 0x463   :  { %v808_v10 = vpop.xlane.xlu0 %807  ;;  %v943_v46 = vmul.f32 %v4068_v34, %v4574_v44 }
 0x464   :  { %4071 = vpow2.f32 %v858_v49  ;;  %v834_v5 = vsub.f32 %v4560_v17, %v808_v10 }
 0x465   :  { %1164 = vxpose.xlu1.b32.cont [3/4] (short) (narrow) %v942_v22, 16  ;;  %v4642_v22 = vpop.f32.mrb[37].mxu0 }
 0x466   :  { %v860_v7 = vmul.f32 1.442695, %v834_v5  ;;  %5132 = vst [vmem:[#allocation14_spill] sm:$0xff] %v4642_v22  ;;  %v4644_v34 = vpop.f32.mrb[38].mxu0 }
 0x467   :  { %v811_v38 = vpop.xlane.xlu0 %810  ;;  %v4646_v5 = vpop.f32.mrb[39].mxu0 }
 0x468   :  { %4073 = vpow2.f32 %v860_v7  ;;  %v835_v40 = vsub.f32 %v4558_v6, %v811_v38  ;;  %5133 = vst [vmem:[#allocation15_spill] sm:$0xff] %v4646_v5  ;;  %v812_v7 = vsel %vm775_vm2, %v4580_v60, -inf  ;;  %v818_v38 = vsel %vm775_vm2, %v4586_v52, -inf }
 0x469   :  { %1165 = vxpose.xlu1.b32.end [4/4] (short) (narrow) %v943_v46, 16  ;;  %v821_v46 = vsel %vm775_vm2, %v4584_v13, -inf }
 0x46a   :  { %v4070_v4 = vpop.eup %4069  ;;  %v862_v19 = vmul.f32 1.442695, %v835_v40 }
 0x46b   :  { %v896_v35 = vsel %vm775_vm2, %v4070_v4, 0.0 }
 0x46c   :  { %4075 = vpow2.f32 %v862_v19  ;;  %897 = vadd.xlane.f32.xlu0 %v896_v35 }
 0x46e   :  { %v4072_v30 = vpop.eup %4071 }
 0x46f   :  { %v899_v49 = vsel %vm775_vm2, %v4072_v30, 0.0 }
 0x470   :  { %900 = vadd.xlane.f32.xlu0 %v899_v49 }
 0x472   :  { %v4074_v15 = vpop.eup %4073 }
 0x473   :  { %v902_v48 = vsel %vm775_vm2, %v4074_v15, 0.0 }
 0x474   :  { %903 = vadd.xlane.f32.xlu0 %v902_v48 }
 0x476   :  { %v4076_v10 = vpop.eup %4075 }
 0x477   :  { %v905_v44 = vsel %vm775_vm2, %v4076_v10, 0.0 }
 0x478   :  { %906 = vadd.xlane.f32.xlu0 %v905_v44 }
 0x490   :  { %813 = vmax.xlane.f32.xlu1 %v812_v7 }
 0x494   :  { %819 = vmax.xlane.f32.xlu1 %v818_v38 }
 0x498   :  { %822 = vmax.xlane.f32.xlu1 %v821_v46 }
 0x4dd   :  { %v1178_v40 = vpop.trf.xlu1 }
 0x4de   :  { %3592 = vmatprep.mubr.msk.f32.mxu1 %vm586_vm1, %v1178_v40 }
 0x4e1   :  { %v1179_v19 = vpop.trf.xlu1 }
 0x4e2   :  { %3593 = vmatmul.mubr.msk.f32.vlgmr.msra.gmra.mrb[14].mxu1 %vm586_vm1, %v1179_v19 }
 0x4e3   :  { %3599 = vmatprep.mubr.msk.f32.mxu1 %vm775_vm2, %v4642_v22 }
 0x4f9   :  { %v898_v35 = vpop.xlane.xlu0 %897 }
 0x4fa   :  { %4077 = vrcp.f32 %v898_v35 }
 0x4fd   :  { %v901_v49 = vpop.xlane.xlu0 %900 }
 0x4fe   :  { %4079 = vrcp.f32 %v901_v49 }
 0x501   :  { %v904_v48 = vpop.xlane.xlu0 %903 }
 0x502   :  { %4081 = vrcp.f32 %v904_v48 }
 0x504   :  { %v4078_v44 = vpop.eup %4077 }
 0x505   :  { %v907_v7 = vpop.xlane.xlu0 %906  ;;  %v944_v38 = vmul.f32 %v4078_v44, %v4070_v4  ;;  %v1890_v44 = vsel %vm1886_vm3, %v4370_v9, -inf }
 0x506   :  { %4083 = vrcp.f32 %v907_v7  ;;  %v1893_v7 = vsel %vm1886_vm3, %v4382_v33, -inf }
 0x507   :  { %1372 = vxpose.xlu0.b32.start [1/4] (short) (narrow) %v944_v38, 16  ;;  %v1896_v38 = vsel %vm1886_vm3, %v4378_v29, -inf }
 0x508   :  { %v4080_v46 = vpop.eup %4079 }
 0x509   :  { %v945_v51 = vmul.f32 %v4080_v46, %v4072_v30  ;;  %v1899_v46 = vsel %vm1886_vm3, %v4513_v37, -inf }
 0x50b   :  { %1373 = vxpose.xlu0.b32.cont [2/4] (short) (narrow) %v945_v51, 16 }
 0x50c   :  { %v4082_v40 = vpop.eup %4081 }
 0x50d   :  { %v946_v42 = vmul.f32 %v4082_v40, %v4074_v15  ;;  %v1902_v40 = vsel %vm1886_vm3, %v4511_v55, -inf }
 0x50f   :  { %1374 = vxpose.xlu0.b32.cont [3/4] (short) (narrow) %v946_v42, 16 }
 0x510   :  { %v4084_v19 = vpop.eup %4083 }
 0x511   :  { %v947_v23 = vmul.f32 %v4084_v19, %v4076_v10  ;;  %v815_v10 = vsel %vm775_vm2, %v4578_v54, -inf  ;;  %v1905_v19 = vsel %vm1886_vm3, %v4518_v39, -inf }
 0x513   :  { %1375 = vxpose.xlu0.b32.end [4/4] (short) (narrow) %v947_v23, 16 }
 0x51d   :  { %v814_v22 = vpop.xlane.xlu1 %813 }
 0x51e   :  { %v836_v35 = vsub.f32 %v4580_v60, %v814_v22  ;;  %v1887_v22 = vsel %vm1886_vm3, %v4372_v18, -inf }
 0x520   :  { %v864_v49 = vmul.f32 1.442695, %v836_v35  ;;  %v1908_v35 = vsel %vm1886_vm3, %v4516_v3, -inf }
 0x522   :  { %4085 = vpow2.f32 %v864_v49  ;;  %v4659_v48 = vpop.f32.mrb[10].mxu1  ;;  %v1911_v49 = vsel %vm1886_vm3, %v4555_v47, -inf }
 0x523   :  { %v4661_v11 = vpop.f32.mrb[11].mxu1 }
 0x526   :  { %v4665_v30 = vpop.f32.mrb[12].mxu1 }
 0x527   :  { %v4667_v51 = vpop.f32.mrb[13].mxu1 }
 0x52c   :  { %v4671_v23 = vpop.eup %4085 }
 0x52d   :  { %v908_v15 = vsel %vm775_vm2, %v4671_v23, 0.0 }
 0x52e   :  { %909 = vadd.xlane.f32.xlu1 %v908_v15  ;;  %v1914_v15 = vsel %vm1886_vm3, %v4553_v62, -inf }
 0x540   :  { %816 = vmax.xlane.f32.xlu0 %v815_v10  ;;  %v1917_v10 = vsel %vm1886_vm3, %v4560_v17, -inf }
 0x544   :  { %1888 = vmax.xlane.f32.xlu0 %v1887_v22  ;;  %v1920_v22 = vsel %vm1886_vm3, %v4558_v6, -inf }
 0x548   :  { %1891 = vmax.xlane.f32.xlu0 %v1890_v44  ;;  %v1923_v44 = vsel %vm1886_vm3, %v4580_v60, -inf }
 0x54c   :  { %1894 = vmax.xlane.f32.xlu0 %v1893_v7  ;;  %v1926_v7 = vsel %vm1886_vm3, %v4578_v54, -inf }
 0x550   :  { %1897 = vmax.xlane.f32.xlu0 %v1896_v38  ;;  %v1932_v38 = vsel %vm1886_vm3, %v4584_v13, -inf }
 0x554   :  { %1900 = vmax.xlane.f32.xlu0 %v1899_v46 }
 0x558   :  { %1903 = vmax.xlane.f32.xlu0 %v1902_v40 }
 0x55c   :  { %1906 = vmax.xlane.f32.xlu0 %v1905_v19 }
 0x560   :  { %1909 = vmax.xlane.f32.xlu0 %v1908_v35 }
 0x564   :  { %1912 = vmax.xlane.f32.xlu0 %v1911_v49 }
 0x568   :  { %1915 = vmax.xlane.f32.xlu0 %v1914_v15  ;;  %v820_v15 = vpop.xlane.xlu1 %819 }
 0x56c   :  { %1918 = vmax.xlane.f32.xlu0 %v1917_v10  ;;  %v838_v10 = vsub.f32 %v4586_v52, %v820_v15 }
 0x570   :  { %1921 = vmax.xlane.f32.xlu0 %v1920_v22  ;;  %v823_v22 = vpop.xlane.xlu1 %822 }
 0x574   :  { %1924 = vmax.xlane.f32.xlu0 %v1923_v44 }
 0x578   :  { %1927 = vmax.xlane.f32.xlu0 %v1926_v7  ;;  %v868_v7 = vmul.f32 1.442695, %v838_v10 }
 0x57c   :  { %1933 = vmax.xlane.f32.xlu0 %v1932_v38  ;;  %v839_v38 = vsub.f32 %v4584_v13, %v823_v22 }
 0x587   :  { %v1388_v35 = vpop.trf.xlu0 }
 0x58b   :  { %v1389_v49 = vpop.trf.xlu0 }
 0x5b5   :  { %v3594_v46 = vpop.f32.mrb[14].mxu1 }
 0x5b6   :  { %v1266_v40 = vpop.f32.mrb[15].mxu1 }
 0x5b7   :  { %v3821_v19 = vpack.c.bf16 %v3594_v46, %v1266_v40 }
 0x5b9   :  { %3822 = vmatprep.subr.bf16.mxu1 %v3821_v19 }
 0x5ba   :  { %3824 = vmatpush3.bf16.msra.mxu1 %v3821_v19  ;;  %v870_v19 = vmul.f32 1.442695, %v839_v38 }
 0x5bb   :  { %3826 = vmatprep.subr.bf16.mxu1 %v4473_v20 }
 0x5bd   :  { %3600 = vmatmul.mubr.msk.f32.vlgmr.msra.gmra.mrb[16].mxu1 %vm775_vm2, %v4640_v21 }
 0x5be   :  { %3602 = vmatprep.mubr.msk.f32.mxu1 %vm775_vm2, %v4646_v5  ;;  %3828 = vmatpush3.bf16.msra.mxu1 %v4473_v20 }
 0x5bf   :  { %3830 = vmatprep.subr.bf16.mxu1 %v4479_v43 }
 0x5c1   :  { %3603 = vmatmul.mubr.msk.f32.gmra.mrb[18].mxu1 %vm775_vm2, %v4644_v34 }
 0x5c2   :  { %3832 = vmatpush3.bf16.msra.mxu1 %v4479_v43  ;;  %3613 = vmatprep.mubr.msk.f32.mxu1 %vm586_vm1, %v1388_v35 }
 0x5c5   :  { %3614 = vmatmul.mubr.msk.f32.vlgmr.msra.gmra.mrb[20].mxu1 %vm586_vm1, %v1389_v49 }
 0x5c6   :  { %3620 = vmatprep.mubr.msk.f32.mxu1 %vm775_vm2, %v4602_v27 }
 0x5cd   :  { %v817_v20 = vpop.xlane.xlu0 %816 }
 0x5ce   :  { %v837_v44 = vsub.f32 %v4578_v54, %v817_v20 }
 0x5d0   :  { %v866_v46 = vmul.f32 1.442695, %v837_v44 }
 0x5d1   :  { %v1889_v43 = vpop.xlane.xlu0 %1888 }
 0x5d2   :  { %4087 = vpow2.f32 %v866_v46  ;;  %v1935_v40 = vsub.f32 %v4372_v18, %v1889_v43 }
 0x5d3   :  { %4089 = vpow2.f32 %v868_v7 }
 0x5d4   :  { %v1951_v35 = vmul.f32 1.442695, %v1935_v40 }
 0x5d5   :  { %v1892_v49 = vpop.xlane.xlu0 %1891 }
 0x5d6   :  { %4091 = vpow2.f32 %v1951_v35  ;;  %v1936_v42 = vsub.f32 %v4370_v9, %v1892_v49 }
 0x5d7   :  { %4093 = vpow2.f32 %v870_v19 }
 0x5d8   :  { %v1953_v15 = vmul.f32 1.442695, %v1936_v42 }
 0x5d9   :  { %v1895_v4 = vpop.xlane.xlu0 %1894 }
 0x5da   :  { %4095 = vpow2.f32 %v1953_v15  ;;  %v1937_v10 = vsub.f32 %v4382_v33, %v1895_v4 }
 0x5dc   :  { %v4727_v20 = vpop.eup %4087  ;;  %v1955_v22 = vmul.f32 1.442695, %v1937_v10 }
 0x5dd   :  { %v1898_v44 = vpop.xlane.xlu0 %1897  ;;  %v911_v18 = vsel %vm775_vm2, %v4727_v20, 0.0  ;;  %v4731_v7 = vpop.eup %4089 }
 0x5de   :  { %4097 = vpow2.f32 %v1955_v22  ;;  %v1938_v38 = vsub.f32 %v4378_v29, %v1898_v44  ;;  %912 = vadd.xlane.f32.xlu1 %v911_v18  ;;  %v914_v33 = vsel %vm775_vm2, %v4731_v7, 0.0 }
 0x5e0   :  { %v4734_v9 = vpop.eup %4091  ;;  %v1957_v42 = vmul.f32 1.442695, %v1938_v38 }
 0x5e1   :  { %v4736_v46 = vpop.xlane.xlu0 %1900  ;;  %1999 = vrot.lane.b32.xlu0 %v4734_v9, %s4218_s0  ;;  %v4742_v4 = vpop.eup %4093 }
 0x5e2   :  { %4099 = vpow2.f32 %v1957_v42  ;;  %915 = vadd.xlane.f32.xlu1 %v914_v33  ;;  %v917_v40 = vsel %vm775_vm2, %v4742_v4, 0.0 }
 0x5e4   :  { %v4744_v43 = vpop.eup %4095 }
 0x5e5   :  { %v1904_v29 = vpop.xlane.xlu0 %1903  ;;  %2001 = vrot.lane.b32.xlu0 %v4744_v43, %s4218_s0 }
 0x5e6   :  { %v1940_v19 = vsub.f32 %v4511_v55, %v1904_v29  ;;  %918 = vadd.xlane.f32.xlu1 %v917_v40 }
 0x5e8   :  { %v4751_v35 = vpop.eup %4097  ;;  %v1961_v49 = vmul.f32 1.442695, %v1940_v19 }
 0x5e9   :  { %v1907_v15 = vpop.xlane.xlu0 %1906  ;;  %2003 = vrot.lane.b32.xlu0 %v4751_v35, %s4218_s0 }
 0x5ea   :  { %4101 = vpow2.f32 %v1961_v49  ;;  %v1941_v10 = vsub.f32 %v4518_v39, %v1907_v15 }
 0x5ec   :  { %v4756_v22 = vpop.eup %4099  ;;  %v1963_v44 = vmul.f32 1.442695, %v1941_v10 }
 0x5ed   :  { %v1910_v18 = vpop.xlane.xlu0 %1909  ;;  %2005 = vrot.lane.b32.xlu0 %v4756_v22, %s4218_s0 }
 0x5ee   :  { %4103 = vpow2.f32 %v1963_v44  ;;  %v1942_v55 = vsub.f32 %v4516_v3, %v1910_v18 }
 0x5f0   :  { %v1965_v38 = vmul.f32 1.442695, %v1942_v55 }
 0x5f1   :  { %v1913_v42 = vpop.xlane.xlu0 %1912 }
 0x5f2   :  { %4105 = vpow2.f32 %v1965_v38  ;;  %v1943_v33 = vsub.f32 %v4555_v47, %v1913_v42 }
 0x5f4   :  { %v4762_v29 = vpop.eup %4101  ;;  %v1967_v40 = vmul.f32 1.442695, %v1943_v33 }
 0x5f5   :  { %v1916_v19 = vpop.xlane.xlu0 %1915  ;;  %2009 = vrot.lane.b32.xlu0 %v4762_v29, %s4218_s0 }
 0x5f6   :  { %4107 = vpow2.f32 %v1967_v40  ;;  %v1944_v39 = vsub.f32 %v4553_v62, %v1916_v19  ;;  %v910_v40 = vpop.xlane.xlu1 %909 }
 0x5f8   :  { %v4767_v49 = vpop.eup %4103  ;;  %v1969_v15 = vmul.f32 1.442695, %v1944_v39 }
 0x5f9   :  { %v4769_v10 = vpop.xlane.xlu0 %1918  ;;  %2011 = vrot.lane.b32.xlu0 %v4767_v49, %s4218_s0 }
 0x5fa   :  { %4109 = vpow2.f32 %v1969_v15 }
 0x5fc   :  { %v4773_v3 = vpop.eup %4105 }
 0x5fd   :  { %v1922_v47 = vpop.xlane.xlu0 %1921  ;;  %2013 = vrot.lane.b32.xlu0 %v4773_v3, %s4218_s0 }
 0x5fe   :  { %v1946_v44 = vsub.f32 %v4558_v6, %v1922_v47 }
 0x600   :  { %v4778_v18 = vpop.eup %4107  ;;  %v1973_v62 = vmul.f32 1.442695, %v1946_v44 }
 0x601   :  { %v4780_v55 = vpop.xlane.xlu0 %1924  ;;  %2015 = vrot.lane.b32.xlu0 %v4778_v18, %s4218_s0 }
 0x602   :  { %4111 = vpow2.f32 %v1973_v62 }
 0x603   :  { %4113 = vrcp.f32 %v910_v40 }
 0x604   :  { %v4786_v42 = vpop.eup %4109 }
 0x605   :  { %v1928_v33 = vpop.xlane.xlu0 %1927  ;;  %2017 = vrot.lane.b32.xlu0 %v4786_v42, %s4218_s0 }
 0x606   :  { %v1948_v6 = vsub.f32 %v4578_v54, %v1928_v33 }
 0x608   :  { %v1977_v19 = vmul.f32 1.442695, %v1948_v6 }
 0x609   :  { %v1934_v39 = vpop.xlane.xlu0 %1933 }
 0x60a   :  { %4115 = vpow2.f32 %v1977_v19  ;;  %v1950_v15 = vsub.f32 %v4584_v13, %v1934_v39 }
 0x60c   :  { %v4792_v47 = vpop.eup %4111  ;;  %v1981_v44 = vmul.f32 1.442695, %v1950_v15 }
 0x60d   :  { %2021 = vrot.lane.b32.xlu0 %v4792_v47, %s4218_s0  ;;  %v4114_v62 = vpop.eup %4113 }
 0x60e   :  { %4117 = vpow2.f32 %v1981_v44  ;;  %v948_v54 = vmul.f32 %v4114_v62, %v4671_v23 }
 0x614   :  { %v4796_v38 = vpop.eup %4115 }
 0x615   :  { %2025 = vrot.lane.b32.xlu0 %v4796_v38, %s4218_s0 }
 0x618   :  { %v4801_v33 = vpop.eup %4117 }
 0x619   :  { %2029 = vrot.lane.b32.xlu0 %v4801_v33, %s4218_s0  ;;  %1582 = vxpose.xlu1.b32.start [1/4] (short) (narrow) %v948_v54, 16 }
 0x653   :  { %v4805_v13 = vpop.permute.xlu0 %1999 }
 0x657   :  { %v2002_v40 = vpop.permute.xlu0 %2001 }
 0x658   :  { %v2050_v6 = vsel %vm775_vm2, %v2002_v40, 0.0 }
 0x659   :  { %2051 = vadd.xlane.f32.xlu0 %v2050_v6 }
 0x65b   :  { %v2004_v19 = vpop.permute.xlu0 %2003 }
 0x65c   :  { %v2053_v39 = vsel %vm775_vm2, %v2004_v19, 0.0 }
 0x65d   :  { %2054 = vadd.xlane.f32.xlu0 %v2053_v39 }
 0x66b   :  { %v913_v15 = vpop.xlane.xlu1 %912 }
 0x66c   :  { %4119 = vrcp.f32 %v913_v15 }
 0x66f   :  { %v916_v44 = vpop.xlane.xlu1 %915 }
 0x670   :  { %4121 = vrcp.f32 %v916_v44 }
 0x673   :  { %v919_v23 = vpop.xlane.xlu1 %918 }
 0x674   :  { %4123 = vrcp.f32 %v919_v23 }
 0x676   :  { %v4120_v62 = vpop.eup %4119 }
 0x677   :  { %v949_v27 = vmul.f32 %v4120_v62, %v4727_v20  ;;  %v1929_v62 = vsel %vm1886_vm3, %v4586_v52, -inf }
 0x679   :  { %1583 = vxpose.xlu1.b32.cont [2/4] (short) (narrow) %v949_v27, 16 }
 0x67a   :  { %v4122_v54 = vpop.eup %4121 }
 0x67b   :  { %v950_v5 = vmul.f32 %v4122_v54, %v4731_v7 }
 0x67d   :  { %1584 = vxpose.xlu1.b32.cont [3/4] (short) (narrow) %v950_v5, 16 }
 0x67e   :  { %v4124_v40 = vpop.eup %4123 }
 0x67f   :  { %v951_v6 = vmul.f32 %v4124_v40, %v4742_v4  ;;  %v1939_v4 = vsub.f32 %v4513_v37, %v4736_v46  ;;  %v1945_v40 = vsub.f32 %v4560_v17, %v4769_v10  ;;  %v2006_v10 = vpop.permute.xlu0 %2005 }
 0x681   :  { %1585 = vxpose.xlu1.b32.end [4/4] (short) (narrow) %v951_v6, 16  ;;  %v1959_v54 = vmul.f32 1.442695, %v1939_v4  ;;  %v5134_v6 = vsub.f32 %v4580_v60, %v4780_v55 }
 0x683   :  { %4125 = vpow2.f32 %v1959_v54  ;;  %v2010_v55 = vpop.permute.xlu0 %2009 }
 0x690   :  { %v4812_v19 = vpop.f32.mrb[16].mxu1 }
 0x691   :  { %v4814_v39 = vpop.f32.mrb[17].mxu1 }
 0x692   :  { %v3856_v15 = vpack.c.bf16 %v4812_v19, %v4814_v39 }
 0x694   :  { %v4818_v44 = vpop.f32.mrb[18].mxu1 }
 0x695   :  { %v4820_v23 = vpop.f32.mrb[19].mxu1 }
 0x698   :  { %v3615_v20 = vpop.f32.mrb[20].mxu1 }
 0x699   :  { %v1476_v5 = vpop.f32.mrb[21].mxu1 }
 0x69a   :  { %v3833_v7 = vpack.c.bf16 %v3615_v20, %v1476_v5  ;;  %v1975_v20 = vmul.f32 1.442695, %v5134_v6  ;;  %v2012_v5 = vpop.permute.xlu0 %2011 }
 0x69b   :  { %v2065_v6 = vsel %vm775_vm2, %v2012_v5, 0.0  ;;  %v2047_v5 = vsel %vm775_vm2, %v4805_v13, 0.0 }
 0x69c   :  { %3834 = vmatprep.subr.bf16.mxu1 %v3833_v7 }
 0x69d   :  { %3836 = vmatpush3.bf16.msra.mxu1 %v3833_v7 }
 0x69e   :  { %3838 = vmatprep.subr.bf16.mxu1 %v4493_v14  ;;  %v2014_v54 = vpop.permute.xlu0 %2013 }
 0x6a0   :  { %3621 = vmatmul.mubr.msk.f32.vlgmr.msra.gmra.mrb[22].mxu1 %vm775_vm2, %v4600_v24 }
 0x6a1   :  { %3623 = vmatprep.mubr.msk.f32.mxu1 %vm775_vm2, %v4606_v56  ;;  %3840 = vmatpush3.bf16.msra.mxu1 %v4493_v14  ;;  %v1971_v14 = vmul.f32 1.442695, %v1945_v40 }
 0x6a2   :  { %3842 = vmatprep.subr.bf16.mxu1 %v4499_v16 }
 0x6a3   :  { %4127 = vpow2.f32 %v1971_v14 }
 0x6a4   :  { %3624 = vmatmul.mubr.msk.f32.gmra.mrb[24].mxu1 %vm775_vm2, %v4604_v28  ;;  %4129 = vpow2.f32 %v1975_v20  ;;  %v2016_v20 = vpop.permute.xlu0 %2015 }
 0x6a5   :  { %3844 = vmatpush3.bf16.msra.mxu1 %v4499_v16  ;;  %v4843_v16 = vpop.eup %4125 }
 0x6a8   :  { %1930 = vmax.xlane.f32.xlu1 %v1929_v62 }
 0x6ad   :  { %v4847_v37 = vpop.eup %4127 }
 0x6ae   :  { %v4851_v46 = vpop.eup %4129 }
 0x6b9   :  { %2007 = vrot.lane.b32.xlu1 %v4843_v16, %s4218_s0 }
 0x6bd   :  { %2019 = vrot.lane.b32.xlu1 %v4847_v37, %s4218_s0 }
 0x6c1   :  { %2023 = vrot.lane.b32.xlu1 %v4851_v46, %s4218_s0 }
 0x6f5   :  { %v1598_v17 = vpop.trf.xlu1 }
 0x6f6   :  { %3634 = vmatprep.mubr.msk.f32.mxu1 %vm586_vm1, %v1598_v17 }
 0x6f9   :  { %v1599_v60 = vpop.trf.xlu1 }
 0x6fa   :  { %3635 = vmatmul.mubr.msk.f32.vlgmr.msra.gmra.mrb[26].mxu1 %vm586_vm1, %v1599_v60  ;;  %v2071_v60 = vsel %vm775_vm2, %v2016_v20, 0.0 }
 0x6fb   :  { %3641 = vmatprep.mubr.msk.f32.mxu1 %vm775_vm2, %v4610_v32 }
 0x735   :  { %v1931_v7 = vpop.xlane.xlu1 %1930 }
 0x736   :  { %v1949_v4 = vsub.f32 %v4586_v52, %v1931_v7 }
 0x738   :  { %v1979_v62 = vmul.f32 1.442695, %v1949_v4 }
 0x739   :  { %v2008_v40 = vpop.permute.xlu1 %2007 }
 0x73a   :  { %4131 = vpow2.f32 %v1979_v62  ;;  %v2059_v14 = vsel %vm775_vm2, %v2008_v40, 0.0  ;;  %v2056_v62 = vsel %vm775_vm2, %v2006_v10, 0.0  ;;  %v2062_v40 = vsel %vm775_vm2, %v2010_v55, 0.0 }
 0x73b   :  { %2060 = vadd.xlane.f32.xlu0 %v2059_v14  ;;  %v2018_v14 = vpop.permute.xlu0 %2017 }
 0x73c   :  { %v2074_v10 = vsel %vm775_vm2, %v2018_v14, 0.0  ;;  %v5135_v14 = vpack.i.bf16 %v4405_v50, %v4399_v45 }
 0x73d   :  { %v2020_v17 = vpop.permute.xlu1 %2019 }
 0x73e   :  { %v2077_v52 = vsel %vm775_vm2, %v2020_v17, 0.0  ;;  %v2068_v17 = vsel %vm775_vm2, %v2014_v54, 0.0 }
 0x73f   :  { %2066 = vadd.xlane.f32.xlu0 %v2065_v6 }
 0x741   :  { %v2024_v7 = vpop.permute.xlu1 %2023 }
 0x742   :  { %v2083_v4 = vsel %vm775_vm2, %v2024_v7, 0.0 }
 0x743   :  { %2072 = vadd.xlane.f32.xlu0 %v2071_v60 }
 0x744   :  { %v4863_v27 = vpop.eup %4131 }
 0x745   :  { %2027 = vrot.lane.b32.xlu1 %v4863_v27, %s4218_s0 }
 0x747   :  { %2078 = vadd.xlane.f32.xlu0 %v2077_v52  ;;  %v2022_v52 = vpop.permute.xlu0 %2021 }
 0x74b   :  { %2084 = vadd.xlane.f32.xlu0 %v2083_v4  ;;  %v2026_v4 = vpop.permute.xlu0 %2025 }
 0x74c   :  { %v2086_v54 = vsel %vm775_vm2, %v2026_v4, 0.0 }
 0x769   :  { %2048 = vadd.xlane.f32.xlu1 %v2047_v5  ;;  %v2080_v5 = vsel %vm775_vm2, %v2022_v52, 0.0  ;;  %v5136_v52 = vpack.i.bf16 %v4438_v26, %v4436_v25 }
 0x76d   :  { %2057 = vadd.xlane.f32.xlu1 %v2056_v62  ;;  %v2030_v62 = vpop.permute.xlu0 %2029 }
 0x771   :  { %2063 = vadd.xlane.f32.xlu1 %v2062_v40  ;;  %v2092_v40 = vsel %vm775_vm2, %v2030_v62, 0.0 }
 0x773   :  { %v4873_v6 = vpop.f32.mrb[22].mxu1 }
 0x774   :  { %v4875_v20 = vpop.f32.mrb[23].mxu1 }
 0x775   :  { %v3862_v60 = vpack.c.bf16 %v4873_v6, %v4875_v20  ;;  %2069 = vadd.xlane.f32.xlu1 %v2068_v17  ;;  %v2052_v17 = vpop.xlane.xlu0 %2051 }
 0x776   :  { %4133 = vrcp.f32 %v2052_v17  ;;  %v4219_v17 = vmov 0.0|0.0  }
 0x777   :  { %v4880_v13 = vpop.f32.mrb[24].mxu1 }
 0x778   :  { %v4882_v7 = vpop.f32.mrb[25].mxu1 }
 0x779   :  { %2075 = vadd.xlane.f32.xlu1 %v2074_v10  ;;  %v2055_v55 = vpop.xlane.xlu0 %2054  ;;  %v5137_v10 = vpack.i.bf16 %v4465_v58, %v4463_v57  ;;  %v5147_v19 = vpack.c.bf16 %v4880_v13, %v4882_v7 }
 0x77a   :  { %4135 = vrcp.f32 %v2055_v55 }
 0x77d   :  { %2081 = vadd.xlane.f32.xlu1 %v2080_v5  ;;  %v5138_v5 = vpack.i.bf16 %v4485_v8, %v4483_v2 }
 0x780   :  { %v4134_v4 = vpop.eup %4133 }
 0x781   :  { %2087 = vadd.xlane.f32.xlu1 %v2086_v54  ;;  %v2112_v45 = vmul.f32 %v4134_v4, %v4744_v43  ;;  %v5139_v43 = vpack.i.bf16 %v4421_v36, %v4418_v1  ;;  %v5141_v36 = vpack.c.bf16 %v4659_v48, %v4661_v11  ;;  %v5143_v11 = vpack.c.bf16 %v4665_v30, %v4667_v51 }
 0x784   :  { %v4136_v50 = vpop.eup %4135 }
 0x785   :  { %2093 = vadd.xlane.f32.xlu1 %v2092_v40  ;;  %v2113_v25 = vmul.f32 %v4136_v50, %v4751_v35  ;;  %v5140_v40 = vpack.i.bf16 %v4443_v53, %v4441_v31  ;;  %v5142_v31 = vpack.i.bf16 %v4469_v63, %v4467_v59  ;;  %v5144_v59 = vld [vmem:[#allocation8_spill] sm:$0xff] }
 0x786   :  { %v5145_v63 = vpack.i.bf16 %v4489_v12, %v5144_v59  ;;  %v5146_v12 = vpack.c.bf16 %v4818_v44, %v4820_v23 }
 0x796   :  { %3956 = vrot.lane.b32.xlu1 %v5135_v14, %s4218_s0 }
 0x79a   :  { %3966 = vrot.lane.b32.xlu1 %v5136_v52, %s4218_s0 }
 0x79e   :  { %3976 = vrot.lane.b32.xlu1 %v5137_v10, %s4218_s0 }
 0x7a2   :  { %3986 = vrot.lane.b32.xlu1 %v5138_v5, %s4218_s0 }
 0x7a6   :  { %2133 = vrot.lane.b32.xlu1 %v2112_v45, %s4218_s0 }
 0x7aa   :  { %2135 = vrot.lane.b32.xlu1 %v2113_v25, %s4218_s0 }
 0x7b7   :  { %v2028_v26 = vpop.permute.xlu1 %2027 }
 0x7b8   :  { %v2089_v55 = vsel %vm775_vm2, %v2028_v26, 0.0 }
 0x7b9   :  { %2090 = vadd.xlane.f32.xlu0 %v2089_v55 }
 0x7c8   :  { %v2061_v57 = vpop.xlane.xlu0 %2060 }
 0x7c9   :  { %4137 = vrcp.f32 %v2061_v57 }
 0x7cc   :  { %v2067_v58 = vpop.xlane.xlu0 %2066 }
 0x7cd   :  { %4139 = vrcp.f32 %v2067_v58  ;;  %v3636_v54 = vpop.f32.mrb[26].mxu1 }
 0x7ce   :  { %v1686_v2 = vpop.f32.mrb[27].mxu1 }
 0x7cf   :  { %v3845_v8 = vpack.c.bf16 %v3636_v54, %v1686_v2  ;;  %3961 = vrot.lane.b32.xlu0 %v5139_v43, %s4218_s0 }
 0x7d0   :  { %v2073_v62 = vpop.xlane.xlu0 %2072 }
 0x7d1   :  { %4141 = vrcp.f32 %v2073_v62  ;;  %3846 = vmatprep.subr.bf16.mxu1 %v3845_v8 }
 0x7d2   :  { %3848 = vmatpush3.bf16.msra.mxu1 %v3845_v8 }
 0x7d3   :  { %v4138_v35 = vpop.eup %4137  ;;  %3971 = vrot.lane.b32.xlu0 %v5140_v40, %s4218_s0  ;;  %3849 = vmatprep.subr.bf16.mxu1 %v4219_v17 }
 0x7d4   :  { %v2079_v14 = vpop.xlane.xlu0 %2078  ;;  %v2115_v52 = vmul.f32 %v4138_v35, %v4843_v16 }
 0x7d5   :  { %4143 = vrcp.f32 %v2079_v14  ;;  %3642 = vmatmul.mubr.msk.f32.vlgmr.msra.gmra.mrb[28].mxu1 %vm775_vm2, %v4608_v61 }
 0x7d6   :  { %2377 = vrot.lane.b32.xlu1 %v2115_v52, %s4218_s0  ;;  %3644 = vmatprep.mubr.msk.f32.mxu1 %vm775_vm2, %v4618_v41 }
 0x7d7   :  { %v4140_v1 = vpop.eup %4139  ;;  %3851 = vmatpush3.bf16.msra.mxu1 %v5141_v36  ;;  %3981 = vrot.lane.b32.xlu0 %v5142_v31, %s4218_s0 }
 0x7d8   :  { %v2085_v53 = vpop.xlane.xlu0 %2084  ;;  %3852 = vmatprep.subr.bf16.mxu1 %v4219_v17  ;;  %v2117_v16 = vmul.f32 %v4140_v1, %v4767_v49 }
 0x7d9   :  { %4145 = vrcp.f32 %v2085_v53  ;;  %3645 = vmatmul.mubr.msk.f32.gmra.mrb[30].mxu1 %vm775_vm2, %v4616_v0 }
 0x7da   :  { %2381 = vrot.lane.b32.xlu1 %v2117_v16, %s4218_s0 }
 0x7db   :  { %v4142_v10 = vpop.eup %4141  ;;  %3854 = vmatpush3.bf16.msra.mxu1 %v5143_v11  ;;  %3991 = vrot.lane.b32.xlu0 %v5145_v63, %s4218_s0 }
 0x7dc   :  { %3855 = vmatprep.subr.bf16.mxu1 %v4219_v17  ;;  %v2119_v48 = vmul.f32 %v4142_v10, %v4778_v18 }
 0x7de   :  { %2623 = vrot.lane.b32.xlu1 %v2119_v48, %s4218_s0 }
 0x7df   :  { %v4144_v49 = vpop.eup %4143  ;;  %3857 = vmatpush3.bf16.msra.mxu1 %v3856_v15 }
 0x7e0   :  { %3858 = vmatprep.subr.bf16.mxu1 %v4219_v17  ;;  %v2121_v30 = vmul.f32 %v4144_v49, %v4847_v37 }
 0x7e2   :  { %2627 = vrot.lane.b32.xlu1 %v2121_v30, %s4218_s0 }
 0x7e3   :  { %v4146_v51 = vpop.eup %4145  ;;  %3860 = vmatpush3.bf16.msra.mxu1 %v5146_v12 }
 0x7e4   :  { %3861 = vmatprep.subr.bf16.mxu1 %v4219_v17  ;;  %v2123_v18 = vmul.f32 %v4146_v51, %v4851_v46 }
 0x7e6   :  { %2869 = vrot.lane.b32.xlu1 %v2123_v18, %s4218_s0 }
 0x7e7   :  { %3863 = vmatpush3.bf16.msra.mxu1 %v3862_v60 }
 0x7e8   :  { %3864 = vmatprep.subr.bf16.mxu1 %v4219_v17 }
 0x7eb   :  { %3866 = vmatpush3.bf16.msra.mxu1 %v5147_v19 }
 0x7ec   :  { %3867 = vmatprep.subr.bf16.mxu1 %v4219_v17 }
 0x7f6   :  { %v2049_v39 = vpop.xlane.xlu1 %2048 }
 0x7f7   :  { %4147 = vrcp.f32 %v2049_v39 }
 0x7fa   :  { %v2058_v15 = vpop.xlane.xlu1 %2057 }
 0x7fb   :  { %4149 = vrcp.f32 %v2058_v15 }
 0x7fe   :  { %v2064_v44 = vpop.xlane.xlu1 %2063 }
 0x7ff   :  { %4151 = vrcp.f32 %v2064_v44 }
 0x801   :  { %v4148_v23 = vpop.eup %4147 }
 0x802   :  { %v2070_v37 = vpop.xlane.xlu1 %2069  ;;  %v2111_v46 = vmul.f32 %v4148_v23, %v4734_v9 }
 0x803   :  { %4153 = vrcp.f32 %v2070_v37 }
 0x804   :  { %2131 = vrot.lane.b32.xlu0 %v2111_v46, %s4218_s0 }
 0x805   :  { %v4150_v6 = vpop.eup %4149 }
 0x806   :  { %v2076_v20 = vpop.xlane.xlu1 %2075  ;;  %v2114_v60 = vmul.f32 %v4150_v6, %v4756_v22 }
 0x807   :  { %4155 = vrcp.f32 %v2076_v20 }
 0x808   :  { %2137 = vrot.lane.b32.xlu0 %v2114_v60, %s4218_s0 }
 0x809   :  { %v4152_v13 = vpop.eup %4151 }
 0x80a   :  { %v2082_v7 = vpop.xlane.xlu1 %2081  ;;  %v2116_v4 = vmul.f32 %v4152_v13, %v4762_v29 }
 0x80b   :  { %4157 = vrcp.f32 %v2082_v7 }
 0x80c   :  { %2379 = vrot.lane.b32.xlu0 %v2116_v4, %s4218_s0 }
 0x80d   :  { %v4154_v5 = vpop.eup %4153 }
 0x80e   :  { %v2088_v45 = vpop.xlane.xlu1 %2087  ;;  %v2118_v9 = vmul.f32 %v4154_v5, %v4773_v3 }
 0x80f   :  { %4159 = vrcp.f32 %v2088_v45 }
 0x810   :  { %2383 = vrot.lane.b32.xlu0 %v2118_v9, %s4218_s0 }
 0x811   :  { %v4156_v50 = vpop.eup %4155 }
 0x812   :  { %v2094_v25 = vpop.xlane.xlu1 %2093  ;;  %v2120_v22 = vmul.f32 %v4156_v50, %v4786_v42 }
 0x813   :  { %4161 = vrcp.f32 %v2094_v25  ;;  %v5005_v25 = vld [vmem:[%s5114_s2] sm:$0xff] }
 0x814   :  { %2625 = vrot.lane.b32.xlu0 %v2120_v22, %s4218_s0 }
 0x815   :  { %v4158_v26 = vpop.eup %4157 }
 0x816   :  { %v4978_v55 = vpop.permute.xlu1 %3956  ;;  %v2122_v29 = vmul.f32 %v4158_v26, %v4792_v47  ;;  %v4221_v47 = vmov 0.0   ;;  %v5148_v26 = vld [vmem:[#allocation10_spill] sm:$0xff] }
 0x817   :  { %3679 = vmatprep.mubr.msk.f32.mxu1 %vm4220_vm4, %v4221_v47  ;;  %v3959_v60 = vunpack.i.h.bf16 %v4978_v55  ;;  %v3958_v13 = vunpack.i.l.bf16 %v4978_v55  ;;  %v5149_v55 = vld [vmem:[#allocation12_spill] sm:$0xff] }
 0x818   :  { %2629 = vrot.lane.b32.xlu0 %v2122_v29, %s4218_s0 }
 0x819   :  { %v4160_v57 = vpop.eup %4159  ;;  %v3873_v45 = vpack.c.bf16 %v3959_v60, %v3958_v13 }
 0x81a   :  { %v3967_v58 = vpop.permute.xlu1 %3966  ;;  %v2124_v3 = vmul.f32 %v4160_v57, %v4796_v38 }
 0x81b   :  { %v3969_v54 = vunpack.i.h.bf16 %v3967_v58  ;;  %v3968_v2 = vunpack.i.l.bf16 %v3967_v58  ;;  %v4222_v58 = vmov 0  }
 0x81c   :  { %2871 = vrot.lane.b32.xlu0 %v2124_v3, %s4218_s0 }
 0x81d   :  { %v4162_v8 = vpop.eup %4161  ;;  %v3885_v42 = vpack.c.bf16 %v3969_v54, %v3968_v2 }
 0x81e   :  { %v2126_v43 = vmul.f32 %v4162_v8, %v4801_v33  ;;  %v3977_v62 = vpop.permute.xlu1 %3976 }
 0x81f   :  { %3886 = vmatprep.subr.bf16.mxu0 %v3885_v42  ;;  %v3979_v36 = vunpack.i.h.bf16 %v3977_v62  ;;  %v3978_v31 = vunpack.i.l.bf16 %v3977_v62 }
 0x820   :  { %2875 = vrot.lane.b32.xlu0 %v2126_v43, %s4218_s0  ;;  %3888 = vmatpush3.bf16.msra.mxu0 %v3885_v42 }
 0x821   :  { %v4991_v63 = vpack.c.bf16 %v3979_v36, %v3978_v31 }
 0x822   :  { %v4988_v35 = vpop.permute.xlu1 %3986 }
 0x823   :  { %v3989_v43 = vunpack.i.h.bf16 %v4988_v35  ;;  %v3988_v62 = vunpack.i.l.bf16 %v4988_v35  ;;  %v35_v35 = vld [vmem:[%s5115_s3] sm:$0xff]  ;;  %s4223_s3 = smov 16  }
 0x826   :  { %v2134_v38 = vpop.permute.xlu1 %2133 }
 0x82a   :  { %v2136_v40 = vpop.permute.xlu1 %2135 }
 0x846   :  { %v2091_v14 = vpop.xlane.xlu0 %2090 }
 0x847   :  { %4163 = vrcp.f32 %v2091_v14 }
 0x848   :  { %v2378_v52 = vpop.permute.xlu1 %2377 }
 0x849   :  { %2389 = vxpose.xlu0.b32.start [1/4] (short) (narrow) %v2378_v52, 16 }
 0x84a   :  { %v3962_v1 = vpop.permute.xlu0 %3961 }
 0x84b   :  { %v3964_v9 = vunpack.i.h.bf16 %v3962_v1  ;;  %v3963_v50 = vunpack.i.l.bf16 %v3962_v1 }
 0x84c   :  { %v2382_v51 = vpop.permute.xlu1 %2381 }
 0x84d   :  { %v3877_v22 = vpack.c.bf16 %v3964_v9, %v3963_v50 }
 0x84e   :  { %v3972_v33 = vpop.permute.xlu0 %3971 }
 0x84f   :  { %v3974_v53 = vunpack.i.h.bf16 %v3972_v33  ;;  %v3973_v16 = vunpack.i.l.bf16 %v3972_v33 }
 0x850   :  { %v2624_v19 = vpop.permute.xlu1 %2623 }
 0x851   :  { %v4164_v10 = vpop.eup %4163  ;;  %v3889_v11 = vpack.c.bf16 %v3974_v53, %v3973_v16 }
 0x852   :  { %v2125_v59 = vmul.f32 %v4164_v10, %v4863_v27  ;;  %v4995_v48 = vpop.permute.xlu0 %3981 }
 0x853   :  { %3890 = vmatprep.subr.bf16.mxu0 %v3889_v11  ;;  %v3984_v54 = vunpack.i.h.bf16 %v4995_v48  ;;  %v3983_v2 = vunpack.i.l.bf16 %v4995_v48 }
 0x854   :  { %2873 = vrot.lane.b32.xlu1 %v2125_v59, %s4218_s0  ;;  %3892 = vmatpush3.bf16.msra.mxu0 %v3889_v11  ;;  %v2628_v39 = vpop.permute.xlu1 %2627 }
 0x855   :  { %3898 = vmatprep.subr.bf16.mxu0 %v4991_v63 }
 0x856   :  { %v4997_v49 = vpop.permute.xlu0 %3991 }
 0x857   :  { %v3994_v52 = vunpack.i.h.bf16 %v4997_v49  ;;  %v3993_v1 = vunpack.i.l.bf16 %v4997_v49 }
 0x858   :  { %v2870_v23 = vpop.permute.xlu1 %2869 }
 0x859   :  { %v3913_v33 = vpack.c.bf16 %v3994_v52, %v3993_v1 }
 0x876   :  { %v2132_v30 = vpop.permute.xlu0 %2131 }
 0x87a   :  { %v2138_v12 = vpop.permute.xlu0 %2137 }
 0x87d   :  { %2143 = vxpose.xlu1.b32.start [1/4] (short) (narrow) %v2132_v30, 16 }
 0x87e   :  { %v2380_v18 = vpop.permute.xlu0 %2379 }
 0x87f   :  { %2390 = vxpose.xlu0.b32.cont [2/4] (short) (narrow) %v2380_v18, 16 }
 0x881   :  { %2144 = vxpose.xlu1.b32.cont [2/4] (short) (narrow) %v2134_v38, 16  ;;  %v3901_v38 = vpack.c.bf16 %v3984_v54, %v3983_v2 }
 0x882   :  { %v2384_v27 = vpop.permute.xlu0 %2383 }
 0x883   :  { %2391 = vxpose.xlu0.b32.cont [3/4] (short) (narrow) %v2382_v51, 16 }
 0x885   :  { %2145 = vxpose.xlu1.b32.cont [3/4] (short) (narrow) %v2136_v40, 16 }
 0x886   :  { %v2626_v15 = vpop.permute.xlu0 %2625 }
 0x887   :  { %2392 = vxpose.xlu0.b32.end [4/4] (short) (narrow) %v2384_v27, 16 }
 0x889   :  { %2146 = vxpose.xlu1.b32.end [4/4] (short) (narrow) %v2138_v12, 16 }
 0x88a   :  { %v2630_v44 = vpop.permute.xlu0 %2629 }
 0x88b   :  { %2635 = vxpose.xlu0.b32.start [1/4] (short) (narrow) %v2624_v19, 16 }
 0x88d   :  { %2881 = vxpose.xlu1.b32.start [1/4] (short) (narrow) %v2870_v23, 16 }
 0x88e   :  { %v2872_v37 = vpop.permute.xlu0 %2871 }
 0x88f   :  { %2636 = vxpose.xlu0.b32.cont [2/4] (short) (narrow) %v2626_v15, 16 }
 0x891   :  { %2882 = vxpose.xlu1.b32.cont [2/4] (short) (narrow) %v2872_v37, 16 }
 0x892   :  { %v2876_v57 = vpop.permute.xlu0 %2875 }
 0x893   :  { %2637 = vxpose.xlu0.b32.cont [3/4] (short) (narrow) %v2628_v39, 16 }
 0x897   :  { %2638 = vxpose.xlu0.b32.end [4/4] (short) (narrow) %v2630_v44, 16 }
 0x8a8   :  { %v3643_v46 = vpop.f32.mrb[28].mxu1 }
 0x8a9   :  { %v1773_v6 = vpop.f32.mrb[29].mxu1 }
 0x8aa   :  { %v3868_v20 = vpack.c.bf16 %v3643_v46, %v1773_v6 }
 0x8ac   :  { %v3646_v7 = vpop.f32.mrb[30].mxu1  ;;  %3869 = vmatpush3.bf16.msra.mxu1 %v3868_v20 }
 0x8ad   :  { %v1783_v4 = vpop.f32.mrb[31].mxu1  ;;  %3870 = vmatprep.subr.bf16.mxu1 %v4219_v17 }
 0x8ae   :  { %v3871_v5 = vpack.c.bf16 %v3646_v7, %v1783_v4 }
 0x8b0   :  { %3872 = vmatpush3.bf16.msra.mxu1 %v3871_v5 }
 0x8b1   :  { %3874 = vmatprep.subr.bf16.mxu1 %v3873_v45 }
 0x8b3   :  { %3680 = vmatmul.mubr.f32.vlgmr.msra.gmra.mrb[32].mxu1 %v5005_v25 }
 0x8b4   :  { %3876 = vmatpush3.bf16.msra.mxu1 %v3873_v45 }
 0x8b5   :  { %3878 = vmatprep.subr.bf16.mxu1 %v3877_v22 }
 0x8b8   :  { %3880 = vmatpush3.bf16.msra.mxu1 %v3877_v22 }
 0x8c0   :  { %2272 = vrot.lane.b32.xlu0 %v5148_v26, %s4218_s0 }
 0x8c1   :  { %3996 = vset.pattern.permute.xlu0 %v4222_v58 }
 0x8c4   :  { %2278 = vrot.lane.b32.xlu0 %v5149_v55, %s4218_s0 }
 0x8c6   :  { %v2874_v29 = vpop.permute.xlu1 %2873 }
 0x8c7   :  { %2883 = vxpose.xlu1.b32.cont [3/4] (short) (narrow) %v2874_v29, 16 }
 0x8c8   :  { %2520 = vrot.lane.b32.xlu0 %v4640_v21, %s4218_s0  ;;  %v5150_v21 = vld [vmem:[#allocation9_spill] sm:$0xff] }
 0x8cb   :  { %2884 = vxpose.xlu1.b32.end [4/4] (short) (narrow) %v2876_v57, 16 }
 0x8cc   :  { %2524 = vrot.lane.b32.xlu0 %v4644_v34, %s4218_s0  ;;  %v5151_v34 = vld [vmem:[#allocation13_spill] sm:$0xff] }
 0x8d0   :  { %2766 = vrot.lane.b32.xlu0 %v4600_v24, %s4218_s0  ;;  %v5152_v24 = vld [vmem:[#allocation14_spill] sm:$0xff] }
 0x8d4   :  { %2770 = vrot.lane.b32.xlu0 %v4604_v28, %s4218_s0  ;;  %v5153_v28 = vld [vmem:[#allocation15_spill] sm:$0xff] }
 0x8d8   :  { %3012 = vrot.lane.b32.xlu0 %v4608_v61, %s4218_s0  ;;  %v36_v61 = vld [vmem:[%s5116_s4] sm:$0xff] }
 0x8dc   :  { %3016 = vrot.lane.b32.xlu0 %v4616_v0, %s4218_s0  ;;  %v5154_v0 = vld [vmem:[#allocation11_spill] sm:$0xff] }
 0x8e0   :  { %1880 = vperm.xlu0 %3996, %v36_v61  }
 0x8e9   :  { %2274 = vrot.lane.b32.xlu1 %v5150_v21, %s4218_s0 }
 0x8ea   :  { %3995 = vset.pattern.permute.xlu1 %v4222_v58 }
 0x8ed   :  { %2276 = vrot.lane.b32.xlu1 %v5151_v34, %s4218_s0 }
 0x8f1   :  { %2518 = vrot.lane.b32.xlu1 %v5152_v24, %s4218_s0 }
 0x8f5   :  { %2522 = vrot.lane.b32.xlu1 %v5153_v28, %s4218_s0 }
 0x8f9   :  { %2764 = vrot.lane.b32.xlu1 %v5154_v0, %s4218_s0 }
 0x8fb   :  { %v2405_v3 = vpop.trf.xlu0 }
 0x8fc   :  { %3711 = vmatprep.mubr.msk.f32.mxu0 %vm586_vm1, %v2405_v3 }
 0x8fd   :  { %v2159_v8 = vpop.trf.xlu1  ;;  %2768 = vrot.lane.b32.xlu1 %v4606_v56, %s4218_s0  ;;  %v3909_v56 = vpack.c.bf16 %v3989_v43, %v3988_v62 }
 0x8fe   :  { %3690 = vmatprep.mubr.msk.f32.mxu1 %vm586_vm1, %v2159_v8 }
 0x8ff   :  { %v2406_v42 = vpop.trf.xlu0 }
 0x900   :  { %3712 = vmatmul.mubr.msk.f32.vlgmr.msra.gmra.mrb[40].mxu0 %vm586_vm1, %v2406_v42 }
 0x901   :  { %3900 = vmatpush3.bf16.msra.mxu0 %v4991_v63  ;;  %v2160_v40 = vpop.trf.xlu1  ;;  %3010 = vrot.lane.b32.xlu1 %v4610_v32, %s4218_s0 }
 0x902   :  { %3902 = vmatprep.subr.bf16.mxu0 %v3901_v38  ;;  %3691 = vmatmul.mubr.msk.f32.vlgmr.msra.gmra.mrb[34].mxu1 %vm586_vm1, %v2160_v40 }
 0x905   :  { %3904 = vmatpush3.bf16.msra.mxu0 %v3901_v38  ;;  %3014 = vrot.lane.b32.xlu1 %v4618_v41, %s4218_s0 }
 0x906   :  { %3910 = vmatprep.subr.bf16.mxu0 %v3909_v56 }
 0x909   :  { %1794 = vperm.xlu1 %3995, %v35_v35  }
 0x90b   :  { %v2651_v14 = vpop.trf.xlu0 }
 0x90c   :  { %3732 = vmatprep.mubr.msk.f32.mxu0 %vm586_vm1, %v2651_v14 }
 0x90f   :  { %v2652_v32 = vpop.trf.xlu0 }
 0x910   :  { %3733 = vmatmul.mubr.msk.f32.vlgmr.msra.gmra.mrb[42].mxu0 %vm586_vm1, %v2652_v32 }
 0x911   :  { %3912 = vmatpush3.bf16.msra.mxu0 %v3909_v56 }
 0x912   :  { %3914 = vmatprep.subr.bf16.mxu0 %v3913_v33 }
 0x915   :  { %3916 = vmatpush3.bf16.msra.mxu0 %v3913_v33 }
 0x916   :  { %3921 = vmatprep.subr.bf16.mxu0 %v4219_v17 }
 0x932   :  { %v2273_v41 = vpop.permute.xlu0 %2272 }
 0x933   :  { %3697 = vmatprep.mubr.msk.f32.mxu1 %vm775_vm2, %v2273_v41 }
 0x936   :  { %v2279_v48 = vpop.permute.xlu0 %2278 }
 0x93a   :  { %v2521_v30 = vpop.permute.xlu0 %2520 }
 0x93e   :  { %v2525_v39 = vpop.permute.xlu0 %2524 }
 0x93f   :  { %v2897_v36 = vpop.trf.xlu1 }
 0x940   :  { %3753 = vmatprep.mubr.msk.f32.mxu0 %vm586_vm1, %v2897_v36 }
 0x942   :  { %v2767_v23 = vpop.permute.xlu0 %2766 }
 0x943   :  { %v2898_v31 = vpop.trf.xlu1 }
 0x944   :  { %3754 = vmatmul.mubr.msk.f32.vlgmr.msra.gmra.mrb[44].mxu0 %vm586_vm1, %v2898_v31 }
 0x945   :  { %3798 = vmatprep.mubr.msk.f32.mxu0 %vm4220_vm4, %v4221_v47 }
 0x946   :  { %v2771_v20 = vpop.permute.xlu0 %2770 }
 0x94a   :  { %v3013_v4 = vpop.permute.xlu0 %3012 }
 0x94e   :  { %v3017_v5 = vpop.permute.xlu0 %3016 }
 0x95b   :  { %v2275_v53 = vpop.permute.xlu1 %2274 }
 0x95f   :  { %v2277_v16 = vpop.permute.xlu1 %2276  ;;  %v5069_v9 = vpop.permute.xlu0 %1880 }
 0x963   :  { %v2519_v10 = vpop.permute.xlu1 %2518 }
 0x967   :  { %v2523_v11 = vpop.permute.xlu1 %2522 }
 0x96b   :  { %v2765_v59 = vpop.permute.xlu1 %2764 }
 0x96f   :  { %v2769_v63 = vpop.permute.xlu1 %2768 }
 0x973   :  { %v3011_v49 = vpop.permute.xlu1 %3010 }
 0x977   :  { %v3015_v51 = vpop.permute.xlu1 %3014 }
 0x986   :  { %v1863_v12 = vpop.f32.mrb[32].mxu1 }
 0x987   :  { %v3681_v18 = vpop.f32.mrb[33].mxu1 }
 0x988   :  { %v5065_v19 = vpop.permute.xlu1 %1794 }
 0x989   :  { %v1864_v27 = vadd.f32 %v1863_v12, %v5065_v19 }
 0x98b   :  { %v1867_v15 = vmul.f32 %v1864_v27, %v1864_v27 }
 0x98d   :  { %v1868_v47 = vsel %vm775_vm2, %v1867_v15, 0.0 }
 0x98e   :  { %v1869_v44 = vrot.slane %v1868_v47, 4 }
 0x990   :  { %v1870_v37 = vadd.f32 %v1869_v44, %v1868_v47 }
 0x992   :  { %v1871_v46 = vrot.slane %v1870_v37, 2 }
 0x994   :  { %v1872_v6 = vadd.f32 %v1871_v46, %v1870_v37 }
 0x996   :  { %v1873_v60 = vrot.slane %v1872_v6, 1 }
 0x998   :  { %v1874_v13 = vadd.f32 %v1873_v60, %v1872_v6 }
 0x99a   :  { %v1875_v7 = vmax.f32 %v1874_v13, 1e-24 }
 0x99c   :  { %4165 = vrsqrt.f32 %v1875_v7 }
 0x9a6   :  { %v4166_v45 = vpop.eup %4165 }
 0x9a7   :  { %v1877_v50 = vmul.f32 %v4166_v45, %v1864_v27 }
 0x9a9   :  { %v1883_v22 = vmul.f32 %v5069_v9, %v1877_v50 }
 0x9ab   :  { %v1884_v26 = vmul.f32 2.828427, %v1883_v22 }
 0x9ad   :  { %1885 = vst.msk [vmem:[#allocation5] sm:$0xff] %vm775_vm2, %v1884_v26 }
 0x9d3   :  { %v3713_v55 = vpop.f32.mrb[40].mxu0 }
 0x9d4   :  { %v2509_v29 = vpop.f32.mrb[41].mxu0 }
 0x9d5   :  { %v3692_v57 = vpop.f32.mrb[34].mxu1  ;;  %v3893_v58 = vpack.c.bf16 %v3713_v55, %v2509_v29 }
 0x9d6   :  { %v2263_v21 = vpop.f32.mrb[35].mxu1 }
 0x9d7   :  { %v3881_v34 = vpack.c.bf16 %v3692_v57, %v2263_v21 }
 0x9d9   :  { %3882 = vmatprep.subr.bf16.mxu1 %v3881_v34 }
 0x9da   :  { %3884 = vmatpush3.bf16.msra.mxu1 %v3881_v34 }
 0x9db   :  { %3894 = vmatprep.subr.bf16.mxu1 %v3893_v58 }
 0x9dd   :  { %3698 = vmatmul.mubr.msk.f32.vlgmr.msra.gmra.mrb[36].mxu1 %vm775_vm2, %v2275_v53 }
 0x9de   :  { %3700 = vmatprep.mubr.msk.f32.mxu1 %vm775_vm2, %v2277_v16  ;;  %3896 = vmatpush3.bf16.msra.mxu1 %v3893_v58 }
 0x9e1   :  { %3701 = vmatmul.mubr.msk.f32.gmra.mrb[38].mxu1 %vm775_vm2, %v2279_v48 }
 0x9e2   :  { %3718 = vmatprep.mubr.msk.f32.mxu1 %vm775_vm2, %v2519_v10 }
 0x9e3   :  { %v3734_v24 = vpop.f32.mrb[42].mxu0 }
 0x9e4   :  { %v2755_v28 = vpop.f32.mrb[43].mxu0 }
 0x9e5   :  { %3719 = vmatmul.mubr.msk.f32.vlgmr.msra.gmra.mrb[40].mxu1 %vm775_vm2, %v2521_v30  ;;  %v3905_v61 = vpack.c.bf16 %v3734_v24, %v2755_v28 }
 0x9e6   :  { %3721 = vmatprep.mubr.msk.f32.mxu1 %vm775_vm2, %v2523_v11 }
 0x9e7   :  { %3906 = vmatprep.subr.bf16.mxu1 %v3905_v61 }
 0x9e8   :  { %3908 = vmatpush3.bf16.msra.mxu1 %v3905_v61 }
 0x9e9   :  { %3722 = vmatmul.mubr.msk.f32.gmra.mrb[42].mxu1 %vm775_vm2, %v2525_v39 }
 0x9ea   :  { %3739 = vmatprep.mubr.msk.f32.mxu1 %vm775_vm2, %v2765_v59 }
 0x9ed   :  { %3740 = vmatmul.mubr.msk.f32.vlgmr.msra.gmra.mrb[44].mxu1 %vm775_vm2, %v2767_v23 }
 0x9ee   :  { %3742 = vmatprep.mubr.msk.f32.mxu1 %vm775_vm2, %v2769_v63 }
 0x9f1   :  { %3743 = vmatmul.mubr.msk.f32.gmra.mrb[46].mxu1 %vm775_vm2, %v2771_v20 }
 0x9f2   :  { %3760 = vmatprep.mubr.msk.f32.mxu1 %vm775_vm2, %v3011_v49 }
 0xa17   :  { %v3755_v0 = vpop.f32.mrb[44].mxu0 }
 0xa18   :  { %v3001_v3 = vpop.f32.mrb[45].mxu0 }
 0xa19   :  { %v3917_v54 = vpack.c.bf16 %v3755_v0, %v3001_v3 }
 0xa1b   :  { %3918 = vmatprep.subr.bf16.mxu1 %v3917_v54 }
 0xa1c   :  { %3920 = vmatpush3.bf16.msra.mxu1 %v3917_v54 }
 0xa1f   :  { %3761 = vmatmul.mubr.msk.f32.vlgmr.msra.gmra.mrb[48].mxu1 %vm775_vm2, %v3013_v4 }
 0xa20   :  { %3763 = vmatprep.mubr.msk.f32.mxu1 %vm775_vm2, %v3015_v51 }
 0xa23   :  { %3764 = vmatmul.mubr.msk.f32.gmra.mrb[50].mxu1 %vm775_vm2, %v3017_v5 }
 0xab0   :  { %v3699_v2 = vpop.f32.mrb[36].mxu1 }
 0xab1   :  { %v2354_v8 = vpop.f32.mrb[37].mxu1 }
 0xab2   :  { %v3922_v42 = vpack.c.bf16 %v3699_v2, %v2354_v8 }
 0xab4   :  { %v3702_v43 = vpop.f32.mrb[38].mxu1  ;;  %3923 = vmatpush3.bf16.msra.mxu0 %v3922_v42 }
 0xab5   :  { %v2364_v62 = vpop.f32.mrb[39].mxu1  ;;  %3924 = vmatprep.subr.bf16.mxu0 %v4219_v17 }
 0xab6   :  { %v3925_v38 = vpack.c.bf16 %v3702_v43, %v2364_v62 }
 0xab8   :  { %v3720_v40 = vpop.f32.mrb[40].mxu1  ;;  %3926 = vmatpush3.bf16.msra.mxu0 %v3925_v38 }
 0xab9   :  { %v2600_v56 = vpop.f32.mrb[41].mxu1  ;;  %3927 = vmatprep.subr.bf16.mxu0 %v4219_v17 }
 0xaba   :  { %v3928_v35 = vpack.c.bf16 %v3720_v40, %v2600_v56 }
 0xabc   :  { %v3723_v14 = vpop.f32.mrb[42].mxu1  ;;  %3929 = vmatpush3.bf16.msra.mxu0 %v3928_v35 }
 0xabd   :  { %v2610_v52 = vpop.f32.mrb[43].mxu1  ;;  %3930 = vmatprep.subr.bf16.mxu0 %v4219_v17 }
 0xabe   :  { %v3931_v1 = vpack.c.bf16 %v3723_v14, %v2610_v52 }
 0xac0   :  { %v3741_v32 = vpop.f32.mrb[44].mxu1  ;;  %3932 = vmatpush3.bf16.msra.mxu0 %v3931_v1 }
 0xac1   :  { %v2846_v33 = vpop.f32.mrb[45].mxu1  ;;  %3933 = vmatprep.subr.bf16.mxu0 %v4219_v17 }
 0xac2   :  { %v3934_v41 = vpack.c.bf16 %v3741_v32, %v2846_v33 }
 0xac4   :  { %v3744_v36 = vpop.f32.mrb[46].mxu1  ;;  %3935 = vmatpush3.bf16.msra.mxu0 %v3934_v41 }
 0xac5   :  { %v2856_v31 = vpop.f32.mrb[47].mxu1  ;;  %3936 = vmatprep.subr.bf16.mxu0 %v4219_v17 }
 0xac6   :  { %v3937_v53 = vpack.c.bf16 %v3744_v36, %v2856_v31 }
 0xac8   :  { %3938 = vmatpush3.bf16.msra.mxu0 %v3937_v53 }
 0xac9   :  { %3939 = vmatprep.subr.bf16.mxu0 %v4219_v17 }
 0xaf2   :  { %v3762_v16 = vpop.f32.mrb[48].mxu1 }
 0xaf3   :  { %v3092_v10 = vpop.f32.mrb[49].mxu1 }
 0xaf4   :  { %v3940_v11 = vpack.c.bf16 %v3762_v16, %v3092_v10 }
 0xaf6   :  { %v3765_v59 = vpop.f32.mrb[50].mxu1  ;;  %3941 = vmatpush3.bf16.msra.mxu0 %v3940_v11 }
 0xaf7   :  { %v3102_v63 = vpop.f32.mrb[51].mxu1  ;;  %3942 = vmatprep.subr.bf16.mxu0 %v4219_v17 }
 0xaf8   :  { %v3943_v48 = vpack.c.bf16 %v3765_v59, %v3102_v63 }
 0xafa   :  { %3944 = vmatpush3.bf16.msra.mxu0 %v3943_v48 }
 0xafd   :  { %3799 = vmatmul.mubr.f32.vlgmr.msra.gmra.mrb[46].mxu0 %v5005_v25 }
 0xbd0   :  { %v3177_v49 = vpop.f32.mrb[46].mxu0 }
 0xbd1   :  { %v3178_v30 = vadd.f32 %v3177_v49, %v5065_v19  ;;  %v3800_v51 = vpop.f32.mrb[47].mxu0 }
 0xbd3   :  { %v3181_v12 = vmul.f32 %v3178_v30, %v3178_v30 }
 0xbd5   :  { %v3182_v18 = vsel %vm775_vm2, %v3181_v12, 0.0 }
 0xbd6   :  { %v3183_v27 = vrot.slane %v3182_v18, 4 }
 0xbd8   :  { %v3184_v39 = vadd.f32 %v3183_v27, %v3182_v18 }
 0xbda   :  { %v3185_v15 = vrot.slane %v3184_v39, 2 }
 0xbdc   :  { %v3186_v47 = vadd.f32 %v3185_v15, %v3184_v39 }
 0xbde   :  { %v3187_v44 = vrot.slane %v3186_v47, 1 }
 0xbe0   :  { %v3188_v23 = vadd.f32 %v3187_v44, %v3186_v47 }
 0xbe2   :  { %v3189_v37 = vmax.f32 %v3188_v23, 1e-24 }
 0xbe4   :  { %4167 = vrsqrt.f32 %v3189_v37 }
 0xbee   :  { %v4168_v17 = vpop.eup %4167 }
 0xbef   :  { %v3191_v46 = vmul.f32 %v4168_v17, %v3178_v30 }
 0xbf1   :  { %v3192_v6 = vmul.f32 %v3191_v46, %v5069_v9 }
 0xbf3   :  { %v3193_v25 = vmul.f32 2.828427, %v3192_v6 }
 0xbf5   :  { %3195 = vrot.lane.b32.xlu1 %v3193_v25, %s4223_s3 }
 0xc67   :  { %v3196_v19 = vpop.permute.xlu1 %3195 }
 0xc68   :  { %3198 = vst.msk [vmem:[#allocation5] sm:$0xff] %vm1886_vm3, %v3196_v19 }
 0xc69   :  { %4202 = shalt.err (!%p4199_p12)
}
 0xc6a   :  { %s4203_s15 = scalar_lea.hbm %s5117_s5, 128 }
 0xc6b   :  { %p4204_p13 = scmp.ne.s32.totalorder %s5117_s5, %s4203_s15  ;;  %p4207_p0 = scmp.lt.u32.totalorder %s4203_s15, %s5117_s5 }
 0xc6d   :  { %p4209_p1 = pnand %p4207_p0, %p4204_p13 }
 0xc6f   :  { %4212 = shalt.err (!%p4209_p1)
}
 0xc70   :  { %3208 = dma.vmem_to_hbm [thread:$0]  %s3206_s11, 128, %s5117_s5, [#allocation4]  }
 0xc71   :  { %4215 = dma.done.wait [#allocation4], 128  }
 0xc72   :  { %4216 = vsyncadd [#allocation4], 4294967168 }
 0xc73   :  { %3212 = vsyncpa [#allocation3], 1 }
 0xc74   :  { %3213 = vsyncpa [#allocation4], 1 }

</bundles_post_ra>
